<compile_context>
chip_gen: v7x
topology: tpu7x:2x2x1
jax: 0.10.0
libtpu: 0.0.40
codegen_flags: <defaults>
</compile_context>

<pallas_src>
import functools
import math

import jax
import jax.numpy as jnp
from jax.experimental import pallas as pl
from jax.experimental.pallas import tpu as pltpu

_LN_EPS = 1e-12                     # TF-style LayerNorm epsilon from the reference.
_VMEM_LIMIT = 48 * 1024 * 1024      # explicit scoped-VMEM limit; headroom on v7x (64 MiB).


def _row_tile(m):
    """Largest row tile (multiple of 8) dividing m that still leaves >=2 programs."""
    for t in (512, 256, 128, 64, 32, 16, 8):
        if m % t == 0 and m // t >= 2:
            return t
    for t in (512, 256, 128, 64, 32, 16, 8):
        if m % t == 0:
            return t
    return m


def _col_tile(n):
    """Output-column tile (multiple of 128) for the plain linear kernel."""
    for t in (512, 384, 256, 128):
        if n % t == 0 and n // t >= 2:
            return t
    return n


def _layernorm(h, gamma, beta):
    mu = jnp.mean(h, axis=-1, keepdims=True)
    var = jnp.mean(jnp.square(h - mu), axis=-1, keepdims=True)
    return gamma * ((h - mu) * jax.lax.rsqrt(var + _LN_EPS)) + beta


def _gelu_tanh(x):
    # tanh-approx GELU: lowers to the (otherwise idle) EUP slot instead of a VPU erf poly.
    c = 0.7978845608028654  # sqrt(2/pi)
    return 0.5 * x * (1.0 + jnp.tanh(c * (x + 0.044715 * x * x * x)))


# ---------------------------- Pallas kernels ----------------------------

def _linear_kernel(x_ref, w_ref, b_ref, o_ref, *, activation):
    """o = act(x @ w + b); bf16 MXU operands (weights already bf16), f32 accumulation."""
    x = x_ref[...]
    if x.dtype != jnp.bfloat16:
        x = x.astype(jnp.bfloat16)
    acc = jnp.dot(x, w_ref[...], preferred_element_type=jnp.float32)
    acc = acc + b_ref[...]
    if activation == "gelu":
        acc = _gelu_tanh(acc)
    o_ref[...] = acc.astype(o_ref.dtype)


def linear(x, w, b, activation=None, out_dtype=jnp.bfloat16):
    m, k = x.shape
    k2, n = w.shape
    assert k == k2
    tm = _row_tile(m)
    tn = _col_tile(n)
    return pl.pallas_call(
        functools.partial(_linear_kernel, activation=activation),
        out_shape=jax.ShapeDtypeStruct((m, n), out_dtype),
        grid=(m // tm, n // tn),
        in_specs=[pl.BlockSpec((tm, k), lambda i, j: (i, 0)),
                  pl.BlockSpec((k, tn), lambda i, j: (0, j)),
                  pl.BlockSpec((1, tn), lambda i, j: (0, j))],
        out_specs=pl.BlockSpec((tm, tn), lambda i, j: (i, j)),
        compiler_params=pltpu.CompilerParams(
            dimension_semantics=("parallel", "parallel"),
            vmem_limit_bytes=_VMEM_LIMIT),
    )(x, w, b)


def _linear_res_ln_kernel(x_ref, w_ref, b_ref, res_ref, g_ref, be_ref, o_ref):
    """o = LayerNorm(residual + x @ w + b) — matmul with fused norm epilogue (f32 math)."""
    x = x_ref[...]
    if x.dtype != jnp.bfloat16:
        x = x.astype(jnp.bfloat16)
    acc = jnp.dot(x, w_ref[...], preferred_element_type=jnp.float32)
    h = res_ref[...] + acc + b_ref[...]
    o_ref[...] = _layernorm(h, g_ref[...], be_ref[...]).astype(o_ref.dtype)


def linear_res_ln(x, w, b, residual, gamma, beta):
    # Full output width (N == D) is kept per block: the fused LayerNorm reduces over
    # the whole feature dim. Weight is bf16, so the (K, D) block is half-size.
    m, k = x.shape
    k2, n = w.shape
    assert k == k2 and residual.shape == (m, n)
    tm = _row_tile(m)
    return pl.pallas_call(
        _linear_res_ln_kernel,
        out_shape=jax.ShapeDtypeStruct((m, n), jnp.float32),
        grid=(m // tm,),
        in_specs=[pl.BlockSpec((tm, k), lambda i: (i, 0)),
                  pl.BlockSpec((k, n), lambda i: (0, 0)),
                  pl.BlockSpec((1, n), lambda i: (0, 0)),
                  pl.BlockSpec((tm, n), lambda i: (i, 0)),
                  pl.BlockSpec((1, n), lambda i: (0, 0)),
                  pl.BlockSpec((1, n), lambda i: (0, 0))],
        out_specs=pl.BlockSpec((tm, n), lambda i: (i, 0)),
        compiler_params=pltpu.CompilerParams(
            dimension_semantics=("parallel",),
            vmem_limit_bytes=_VMEM_LIMIT),
    )(x, w, b, residual, gamma, beta)


def _embed_ln_kernel(x_ref, pos_ref, g_ref, b_ref, o_ref):
    """o = LayerNorm(x + pos_embed) — fused add + norm on a (ts, D) row tile."""
    h = x_ref[0] + pos_ref[...]
    o_ref[0] = _layernorm(h, g_ref[...], b_ref[...]).astype(o_ref.dtype)


def embed_ln(x, pos, gamma, beta):
    b, s, d = x.shape
    ts = _row_tile(s)
    return pl.pallas_call(
        _embed_ln_kernel,
        out_shape=jax.ShapeDtypeStruct((b, s, d), jnp.float32),
        grid=(b, s // ts),
        in_specs=[pl.BlockSpec((1, ts, d), lambda i, j: (i, j, 0)),
                  pl.BlockSpec((ts, d), lambda i, j: (j, 0)),
                  pl.BlockSpec((1, d), lambda i, j: (0, 0)),
                  pl.BlockSpec((1, d), lambda i, j: (0, 0))],
        out_specs=pl.BlockSpec((1, ts, d), lambda i, j: (i, j, 0)),
        compiler_params=pltpu.CompilerParams(
            dimension_semantics=("parallel", "parallel"),
            vmem_limit_bytes=_VMEM_LIMIT),
    )(x, pos, gamma, beta)


def _attention_kernel(qkv_ref, bias_ref, o_ref, *, n_heads):
    """Fused multi-head attention for one batch element, reading the QKV slab directly.

    Heads are processed one at a time (static lane slices of the slab), so only an
    (S, S) f32 score block is live at once instead of (H, S, S). The 1/sqrt(W) scale
    is already folded into the Q projection; `bias_ref` holds (mask-1)*10000.
    """
    # TODO(synk): for very long sequences, switch to flash-style key-block tiling
    # (online softmax) instead of a full (S, S) score block per head.
    s_len = qkv_ref.shape[1]
    d = qkv_ref.shape[2] // 3
    w = d // n_heads
    bias = bias_ref[0]                                   # (1, S) f32, broadcast over queries
    outs = []
    for h in range(n_heads):
        q = qkv_ref[0, :, h * w:(h + 1) * w]             # (S, W) bf16
        k = qkv_ref[0, :, d + h * w:d + (h + 1) * w]     # (S, W) bf16
        v = qkv_ref[0, :, 2 * d + h * w:2 * d + (h + 1) * w]
        sc = jax.lax.dot_general(q, k, (((1,), (1,)), ((), ())),
                                 preferred_element_type=jnp.float32)   # (S, S)
        sc = sc + bias
        m = jnp.max(sc, axis=-1, keepdims=True)
        p = jnp.exp(sc - m)
        denom = jnp.sum(p, axis=-1, keepdims=True)
        p = p * pl.reciprocal(denom, approx=True)
        outs.append(jnp.dot(p.astype(jnp.bfloat16), v,
                            preferred_element_type=jnp.float32))       # (S, W)
    o_ref[0] = jnp.concatenate(outs, axis=-1).astype(o_ref.dtype)      # (S, D)


def attention(qkv, mask_bias, n_heads):
    b, s, d3 = qkv.shape
    d = d3 // 3
    return pl.pallas_call(
        functools.partial(_attention_kernel, n_heads=n_heads),
        out_shape=jax.ShapeDtypeStruct((b, s, d), jnp.bfloat16),
        grid=(b,),
        in_specs=[pl.BlockSpec((1, s, d3), lambda i: (i, 0, 0)),
                  pl.BlockSpec((1, 1, s), lambda i: (i, 0, 0))],
        out_specs=pl.BlockSpec((1, s, d), lambda i: (i, 0, 0)),
        compiler_params=pltpu.CompilerParams(
            dimension_semantics=("parallel",),
            vmem_limit_bytes=_VMEM_LIMIT),
    )(qkv, mask_bias)


# ----------------------------- parameters -----------------------------

def _linear_init(key, fan_in, fan_out):
    kw, kb = jax.random.split(key)
    bound = 1.0 / math.sqrt(fan_in)
    w = jax.random.uniform(kw, (fan_in, fan_out), jnp.float32, -bound, bound)
    b = jax.random.uniform(kb, (1, fan_out), jnp.float32, -bound, bound)
    return w, b


def init_block_params(key, dim, dim_ff, n_heads):
    ks = jax.random.split(key, 6)
    wq, bq = _linear_init(ks[0], dim, dim)
    wk, bk = _linear_init(ks[1], dim, dim)
    wv, bv = _linear_init(ks[2], dim, dim)
    w_proj, b_proj = _linear_init(ks[3], dim, dim)
    w_fc1, b_fc1 = _linear_init(ks[4], dim, dim_ff)
    w_fc2, b_fc2 = _linear_init(ks[5], dim_ff, dim)
    # Fold the 1/sqrt(head_dim) attention scale into the Q projection (zero runtime cost).
    scale = 1.0 / math.sqrt(dim // n_heads)
    wq = wq * scale
    bq = bq * scale
    return {
        # Lane-dense fused QKV weight, stored bf16 (MXU operand dtype; half HBM traffic).
        "w_qkv": jnp.concatenate([wq, wk, wv], axis=1).astype(jnp.bfloat16),
        "b_qkv": jnp.concatenate([bq, bk, bv], axis=1),            # f32 (post-acc add)
        "w_proj": w_proj.astype(jnp.bfloat16), "b_proj": b_proj,
        "ln1_g": jnp.ones((1, dim), jnp.float32),
        "ln1_b": jnp.zeros((1, dim), jnp.float32),
        "w_fc1": w_fc1.astype(jnp.bfloat16), "b_fc1": b_fc1,
        "w_fc2": w_fc2.astype(jnp.bfloat16), "b_fc2": b_fc2,
        "ln2_g": jnp.ones((1, dim), jnp.float32),
        "ln2_b": jnp.zeros((1, dim), jnp.float32),
    }


def init_params(key, dim, dim_ff, p_dim, n_heads, n_layers):
    keys = jax.random.split(key, n_layers + 1)
    return {
        "pos_embed": jax.random.normal(keys[0], (p_dim, dim), jnp.float32),
        "embed_ln_g": jnp.ones((1, dim), jnp.float32),
        "embed_ln_b": jnp.zeros((1, dim), jnp.float32),
        "blocks": [init_block_params(k, dim, dim_ff, n_heads) for k in keys[1:]],
    }


# ----------------------------- forward pass -----------------------------

def block_forward(h, mask_bias, p, n_heads):
    b, s, d = h.shape
    m = b * s
    h2 = h.reshape(m, d)                                       # f32 residual stream

    # Fused QKV projection -> (M, 3D) lane-dense bf16 slab.
    qkv = linear(h2, p["w_qkv"], p["b_qkv"], out_dtype=jnp.bfloat16)
    qkv = qkv.reshape(b, s, 3 * d)                             # contiguous: no relayout

    # Fused multi-head attention; output already in (B, S, D) layout (no XLA transposes).
    ctx = attention(qkv, mask_bias, n_heads).reshape(m, d)     # bf16

    # Output projection + residual + LayerNorm fused into one kernel (f32 out).
    h2 = linear_res_ln(ctx, p["w_proj"], p["b_proj"], h2, p["ln1_g"], p["ln1_b"])

    # Position-wise FFN: fc1 + GELU (bf16 out), then fc2 + residual + LayerNorm (fused).
    ff = linear(h2, p["w_fc1"], p["b_fc1"], activation="gelu", out_dtype=jnp.bfloat16)
    h2 = linear_res_ln(ff, p["w_fc2"], p["b_fc2"], h2, p["ln2_g"], p["ln2_b"])
    return h2.reshape(b, s, d)


def transformer_forward(x, mask, params, n_heads):
    # TODO(synk): dropout (p_drop_attn / p_drop_hidden) treated as identity (inference).
    b, s, d = x.shape
    # Additive mask bias precomputed once: scores += (mask - 1) * 10000.
    mask_bias = ((mask.astype(jnp.float32) - 1.0) * 10000.0).reshape(b, 1, s)
    h = embed_ln(x.astype(jnp.float32), params["pos_embed"][:s],
                 params["embed_ln_g"], params["embed_ln_b"])
    for blk in params["blocks"]:
        h = block_forward(h, mask_bias, blk, n_heads)
    return h


if __name__ == "__main__":
    key = jax.random.PRNGKey(0)
    pkey, xkey = jax.random.split(key)

    # Small config consistent with the module: B=2, S=8, dim=32, heads=4, ff=128.
    batch, seq, dim, n_heads, dim_ff, p_dim, n_layers = 2, 8, 32, 4, 128, 64, 2

    params = init_params(pkey, dim, dim_ff, p_dim, n_heads, n_layers)
    x = jax.random.normal(xkey, (batch, seq, dim), jnp.float32)
    # Deterministic attention mask: second sequence has 2 padded positions.
    lens = jnp.array([[seq], [seq - 2]], jnp.int32)
    mask = (jnp.arange(seq)[None, :] < lens).astype(jnp.float32)   # (B, S)

    fwd = jax.jit(functools.partial(transformer_forward, n_heads=n_heads))
    out = jax.block_until_ready(fwd(x, mask, params))

    assert out.shape == (batch, seq, dim), out.shape
    assert bool(jnp.all(jnp.isfinite(out)))
    print("KERNEL_OK")
</pallas_src>

<mosaic_0001>
module attributes {stable_mosaic.version = 11 : i64} {
  func.func @_linear_kernel(%arg0: i32, %arg1: i32, %arg2: memref<8x32xf32, #tpu.memory_space<vmem>>, %arg3: memref<32x96xbf16, #tpu.memory_space<vmem>>, %arg4: memref<1x96xf32, #tpu.memory_space<vmem>>, %arg5: memref<8x96xbf16, #tpu.memory_space<vmem>>) attributes {dimension_semantics = [#tpu.dimension_semantics<parallel>, #tpu.dimension_semantics<parallel>], iteration_bounds = array<i64: 2, 1>, scalar_prefetch = 0 : i64, scratch_operands = 0 : i64, tpu.core_type = #tpu.core_type<tc>, window_params = [{transform_indices = @transform_0, window_bounds = array<i64: 8, 32>}, {transform_indices = @transform_1, window_bounds = array<i64: 32, 96>}, {transform_indices = @transform_2, window_bounds = array<i64: 1, 96>}, {transform_indices = @transform_3, window_bounds = array<i64: 8, 96>}]} {
    %c0 = arith.constant 0 : index
    %c0_0 = arith.constant 0 : index
    %0 = vector.load %arg2[%c0, %c0_0] : memref<8x32xf32, #tpu.memory_space<vmem>>, vector<8x32xf32>
    %1 = arith.truncf %0 : vector<8x32xf32> to vector<8x32xbf16>
    %c0_1 = arith.constant 0 : index
    %c0_2 = arith.constant 0 : index
    %2 = vector.load %arg3[%c0_1, %c0_2] : memref<32x96xbf16, #tpu.memory_space<vmem>>, vector<32x96xbf16>
    %cst = arith.constant dense<0.000000e+00> : vector<8x96xf32>
    %3 = tpu.matmul %1, %2, %cst {dimension_numbers = #tpu.dot_dimension_numbers<[1], [0], [0], [1], [0, 0, 1, 1], [], []>} : vector<8x32xbf16>, vector<32x96xbf16>, vector<8x96xf32> -> vector<8x96xf32>
    %c0_3 = arith.constant 0 : index
    %c0_4 = arith.constant 0 : index
    %4 = vector.load %arg4[%c0_3, %c0_4] : memref<1x96xf32, #tpu.memory_space<vmem>>, vector<1x96xf32>
    %5 = vector.broadcast %4 : vector<1x96xf32> to vector<8x96xf32>
    %6 = arith.addf %3, %5 : vector<8x96xf32>
    %7 = arith.truncf %6 : vector<8x96xf32> to vector<8x96xbf16>
    %c0_5 = arith.constant 0 : index
    %c0_6 = arith.constant 0 : index
    %8 = vector.load %arg5[%c0_5, %c0_6] : memref<8x96xbf16, #tpu.memory_space<vmem>>, vector<8x96xbf16>
    tpu.vector_store %arg5[%c0_5, %c0_6], %7 {strides = array<i32>} : memref<8x96xbf16, #tpu.memory_space<vmem>>, vector<8x96xbf16>,
    return
  }
  func.func @transform_0(%arg0: i32, %arg1: i32) -> (i32, i32) {
    %c0_i32 = arith.constant 0 : i32
    %c0_i32_0 = arith.constant 0 : i32
    return %arg0, %c0_i32 : i32, i32
  }
  func.func @transform_1(%arg0: i32, %arg1: i32) -> (i32, i32) {
    %c0_i32 = arith.constant 0 : i32
    %c0_i32_0 = arith.constant 0 : i32
    return %c0_i32, %arg1 : i32, i32
  }
  func.func @transform_2(%arg0: i32, %arg1: i32) -> (i32, i32) {
    %c0_i32 = arith.constant 0 : i32
    %c0_i32_0 = arith.constant 0 : i32
    return %c0_i32, %arg1 : i32, i32
  }
  func.func @transform_3(%arg0: i32, %arg1: i32) -> (i32, i32) {
    %c0_i32 = arith.constant 0 : i32
    return %arg0, %arg1 : i32, i32
  }
}

module attributes {stable_mosaic.version = 11 : i64} {
  func.func @_embed_ln_kernel(%arg0: i32, %arg1: i32, %arg2: memref<1x8x32xf32, #tpu.memory_space<vmem>>, %arg3: memref<8x32xf32, #tpu.memory_space<vmem>>, %arg4: memref<1x32xf32, #tpu.memory_space<vmem>>, %arg5: memref<1x32xf32, #tpu.memory_space<vmem>>, %arg6: memref<1x8x32xf32, #tpu.memory_space<vmem>>) attributes {dimension_semantics = [#tpu.dimension_semantics<parallel>, #tpu.dimension_semantics<parallel>], iteration_bounds = array<i64: 2, 1>, scalar_prefetch = 0 : i64, scratch_operands = 0 : i64, tpu.core_type = #tpu.core_type<tc>, window_params = [{transform_indices = @transform_0, window_bounds = array<i64: 1, 8, 32>}, {transform_indices = @transform_1, window_bounds = array<i64: 8, 32>}, {pipeline_mode = #tpu.pipeline_mode<synchronous>, transform_indices = @transform_2, window_bounds = array<i64: 1, 32>}, {pipeline_mode = #tpu.pipeline_mode<synchronous>, transform_indices = @transform_3, window_bounds = array<i64: 1, 32>}, {transform_indices = @transform_4, window_bounds = array<i64: 1, 8, 32>}]} {
    %c0 = arith.constant 0 : index
    %c0_0 = arith.constant 0 : index
    %c0_1 = arith.constant 0 : index
    %0 = vector.load %arg2[%c0, %c0_0, %c0_1] : memref<1x8x32xf32, #tpu.memory_space<vmem>>, vector<1x8x32xf32>
    %1 = vector.shape_cast %0 : vector<1x8x32xf32> to vector<8x32xf32>
    %c0_2 = arith.constant 0 : index
    %c0_3 = arith.constant 0 : index
    %2 = vector.load %arg3[%c0_2, %c0_3] : memref<8x32xf32, #tpu.memory_space<vmem>>, vector<8x32xf32>
    %3 = arith.addf %1, %2 : vector<8x32xf32>
    %c0_4 = arith.constant 0 : index
    %c0_5 = arith.constant 0 : index
    %4 = vector.load %arg4[%c0_4, %c0_5] : memref<1x32xf32, #tpu.memory_space<vmem>>, vector<1x32xf32>
    %c0_6 = arith.constant 0 : index
    %c0_7 = arith.constant 0 : index
    %5 = vector.load %arg5[%c0_6, %c0_7] : memref<1x32xf32, #tpu.memory_space<vmem>>, vector<1x32xf32>
    %cst = arith.constant dense<0.000000e+00> : vector<8xf32>
    %6 = vector.multi_reduction <add>, %3, %cst [1] : vector<8x32xf32> to vector<8xf32>
    %7 = vector.shape_cast %6 : vector<8xf32> to vector<8x1xf32>
    %cst_8 = arith.constant 3.200000e+01 : f32
    %8 = vector.broadcast %cst_8 : f32 to vector<8x1xf32>
    %9 = arith.divf %7, %8 : vector<8x1xf32>
    %10 = vector.broadcast %9 : vector<8x1xf32> to vector<8x32xf32>
    %11 = arith.subf %3, %10 : vector<8x32xf32>
    %12 = arith.mulf %11, %11 : vector<8x32xf32>
    %cst_9 = arith.constant dense<0.000000e+00> : vector<8xf32>
    %13 = vector.multi_reduction <add>, %12, %cst_9 [1] : vector<8x32xf32> to vector<8xf32>
    %14 = vector.shape_cast %13 : vector<8xf32> to vector<8x1xf32>
    %cst_10 = arith.constant 3.200000e+01 : f32
    %15 = vector.broadcast %cst_10 : f32 to vector<8x1xf32>
    %16 = arith.divf %14, %15 : vector<8x1xf32>
    %17 = vector.broadcast %9 : vector<8x1xf32> to vector<8x32xf32>
    %18 = arith.subf %3, %17 : vector<8x32xf32>
    %cst_11 = arith.constant 9.99999996E-13 : f32
    %19 = vector.broadcast %cst_11 : f32 to vector<8x1xf32>
    %20 = arith.addf %16, %19 : vector<8x1xf32>
    %21 = math.rsqrt %20 : vector<8x1xf32>
    %22 = vector.broadcast %21 : vector<8x1xf32> to vector<8x32xf32>
    %23 = arith.mulf %18, %22 : vector<8x32xf32>
    %24 = vector.broadcast %4 : vector<1x32xf32> to vector<8x32xf32>
    %25 = arith.mulf %24, %23 : vector<8x32xf32>
    %26 = vector.broadcast %5 : vector<1x32xf32> to vector<8x32xf32>
    %27 = arith.addf %25, %26 : vector<8x32xf32>
    %c0_12 = arith.constant 0 : index
    %c0_13 = arith.constant 0 : index
    %c0_14 = arith.constant 0 : index
    %28 = vector.load %arg6[%c0_12, %c0_13, %c0_14] : memref<1x8x32xf32, #tpu.memory_space<vmem>>, vector<1x8x32xf32>
    %29 = vector.shape_cast %28 : vector<1x8x32xf32> to vector<8x32xf32>
    %30 = vector.shape_cast %27 : vector<8x32xf32> to vector<1x8x32xf32>
    tpu.vector_store %arg6[%c0_12, %c0_13, %c0_14], %30 {strides = array<i32>} : memref<1x8x32xf32, #tpu.memory_space<vmem>>, vector<1x8x32xf32>,
    return
  }
  func.func @transform_0(%arg0: i32, %arg1: i32) -> (i32, i32, i32) {
    %c0_i32 = arith.constant 0 : i32
    %c0_i32_0 = arith.constant 0 : i32
    return %arg0, %arg1, %c0_i32 : i32, i32, i32
  }
  func.func @transform_1(%arg0: i32, %arg1: i32) -> (i32, i32) {
    %c0_i32 = arith.constant 0 : i32
    %c0_i32_0 = arith.constant 0 : i32
    return %arg1, %c0_i32 : i32, i32
  }
  func.func @transform_2(%arg0: i32, %arg1: i32) -> (i32, i32) {
    %c0_i32 = arith.constant 0 : i32
    %c0_i32_0 = arith.constant 0 : i32
    %c0_i32_1 = arith.constant 0 : i32
    return %c0_i32, %c0_i32_0 : i32, i32
  }
  func.func @transform_3(%arg0: i32, %arg1: i32) -> (i32, i32) {
    %c0_i32 = arith.constant 0 : i32
    %c0_i32_0 = arith.constant 0 : i32
    %c0_i32_1 = arith.constant 0 : i32
    return %c0_i32, %c0_i32_0 : i32, i32
  }
  func.func @transform_4(%arg0: i32, %arg1: i32) -> (i32, i32, i32) {
    %c0_i32 = arith.constant 0 : i32
    %c0_i32_0 = arith.constant 0 : i32
    return %arg0, %arg1, %c0_i32 : i32, i32, i32
  }
}

module attributes {stable_mosaic.version = 11 : i64} {
  func.func @_linear_res_ln_kernel(%arg0: i32, %arg1: memref<8x32xbf16, #tpu.memory_space<vmem>>, %arg2: memref<32x32xbf16, #tpu.memory_space<vmem>>, %arg3: memref<1x32xf32, #tpu.memory_space<vmem>>, %arg4: memref<8x32xf32, #tpu.memory_space<vmem>>, %arg5: memref<1x32xf32, #tpu.memory_space<vmem>>, %arg6: memref<1x32xf32, #tpu.memory_space<vmem>>, %arg7: memref<8x32xf32, #tpu.memory_space<vmem>>) attributes {dimension_semantics = [#tpu.dimension_semantics<parallel>], iteration_bounds = array<i64: 2>, scalar_prefetch = 0 : i64, scratch_operands = 0 : i64, tpu.core_type = #tpu.core_type<tc>, window_params = [{transform_indices = @transform_0, window_bounds = array<i64: 8, 32>}, {pipeline_mode = #tpu.pipeline_mode<synchronous>, transform_indices = @transform_1, window_bounds = array<i64: 32, 32>}, {pipeline_mode = #tpu.pipeline_mode<synchronous>, transform_indices = @transform_2, window_bounds = array<i64: 1, 32>}, {transform_indices = @transform_3, window_bounds = array<i64: 8, 32>}, {pipeline_mode = #tpu.pipeline_mode<synchronous>, transform_indices = @transform_4, window_bounds = array<i64: 1, 32>}, {pipeline_mode = #tpu.pipeline_mode<synchronous>, transform_indices = @transform_5, window_bounds = array<i64: 1, 32>}, {transform_indices = @transform_6, window_bounds = array<i64: 8, 32>}]} {
    %c0 = arith.constant 0 : index
    %c0_0 = arith.constant 0 : index
    %0 = vector.load %arg1[%c0, %c0_0] : memref<8x32xbf16, #tpu.memory_space<vmem>>, vector<8x32xbf16>
    %c0_1 = arith.constant 0 : index
    %c0_2 = arith.constant 0 : index
    %1 = vector.load %arg2[%c0_1, %c0_2] : memref<32x32xbf16, #tpu.memory_space<vmem>>, vector<32x32xbf16>
    %cst = arith.constant dense<0.000000e+00> : vector<8x32xf32>
    %2 = tpu.matmul %0, %1, %cst {dimension_numbers = #tpu.dot_dimension_numbers<[1], [0], [0], [1], [0, 0, 1, 1], [], []>} : vector<8x32xbf16>, vector<32x32xbf16>, vector<8x32xf32> -> vector<8x32xf32>
    %c0_3 = arith.constant 0 : index
    %c0_4 = arith.constant 0 : index
    %3 = vector.load %arg4[%c0_3, %c0_4] : memref<8x32xf32, #tpu.memory_space<vmem>>, vector<8x32xf32>
    %4 = arith.addf %3, %2 : vector<8x32xf32>
    %c0_5 = arith.constant 0 : index
    %c0_6 = arith.constant 0 : index
    %5 = vector.load %arg3[%c0_5, %c0_6] : memref<1x32xf32, #tpu.memory_space<vmem>>, vector<1x32xf32>
    %6 = vector.broadcast %5 : vector<1x32xf32> to vector<8x32xf32>
    %7 = arith.addf %4, %6 : vector<8x32xf32>
    %c0_7 = arith.constant 0 : index
    %c0_8 = arith.constant 0 : index
    %8 = vector.load %arg5[%c0_7, %c0_8] : memref<1x32xf32, #tpu.memory_space<vmem>>, vector<1x32xf32>
    %c0_9 = arith.constant 0 : index
    %c0_10 = arith.constant 0 : index
    %9 = vector.load %arg6[%c0_9, %c0_10] : memref<1x32xf32, #tpu.memory_space<vmem>>, vector<1x32xf32>
    %cst_11 = arith.constant dense<0.000000e+00> : vector<8xf32>
    %10 = vector.multi_reduction <add>, %7, %cst_11 [1] : vector<8x32xf32> to vector<8xf32>
    %11 = vector.shape_cast %10 : vector<8xf32> to vector<8x1xf32>
    %cst_12 = arith.constant 3.200000e+01 : f32
    %12 = vector.broadcast %cst_12 : f32 to vector<8x1xf32>
    %13 = arith.divf %11, %12 : vector<8x1xf32>
    %14 = vector.broadcast %13 : vector<8x1xf32> to vector<8x32xf32>
    %15 = arith.subf %7, %14 : vector<8x32xf32>
    %16 = arith.mulf %15, %15 : vector<8x32xf32>
    %cst_13 = arith.constant dense<0.000000e+00> : vector<8xf32>
    %17 = vector.multi_reduction <add>, %16, %cst_13 [1] : vector<8x32xf32> to vector<8xf32>
    %18 = vector.shape_cast %17 : vector<8xf32> to vector<8x1xf32>
    %cst_14 = arith.constant 3.200000e+01 : f32
    %19 = vector.broadcast %cst_14 : f32 to vector<8x1xf32>
    %20 = arith.divf %18, %19 : vector<8x1xf32>
    %21 = vector.broadcast %13 : vector<8x1xf32> to vector<8x32xf32>
    %22 = arith.subf %7, %21 : vector<8x32xf32>
    %cst_15 = arith.constant 9.99999996E-13 : f32
    %23 = vector.broadcast %cst_15 : f32 to vector<8x1xf32>
    %24 = arith.addf %20, %23 : vector<8x1xf32>
    %25 = math.rsqrt %24 : vector<8x1xf32>
    %26 = vector.broadcast %25 : vector<8x1xf32> to vector<8x32xf32>
    %27 = arith.mulf %22, %26 : vector<8x32xf32>
    %28 = vector.broadcast %8 : vector<1x32xf32> to vector<8x32xf32>
    %29 = arith.mulf %28, %27 : vector<8x32xf32>
    %30 = vector.broadcast %9 : vector<1x32xf32> to vector<8x32xf32>
    %31 = arith.addf %29, %30 : vector<8x32xf32>
    %c0_16 = arith.constant 0 : index
    %c0_17 = arith.constant 0 : index
    %32 = vector.load %arg7[%c0_16, %c0_17] : memref<8x32xf32, #tpu.memory_space<vmem>>, vector<8x32xf32>
    tpu.vector_store %arg7[%c0_16, %c0_17], %31 {strides = array<i32>} : memref<8x32xf32, #tpu.memory_space<vmem>>, vector<8x32xf32>,
    return
  }
  func.func @transform_0(%arg0: i32) -> (i32, i32) {
    %c0_i32 = arith.constant 0 : i32
    %c0_i32_0 = arith.constant 0 : i32
    return %arg0, %c0_i32 : i32, i32
  }
  func.func @transform_1(%arg0: i32) -> (i32, i32) {
    %c0_i32 = arith.constant 0 : i32
    %c0_i32_0 = arith.constant 0 : i32
    %c0_i32_1 = arith.constant 0 : i32
    return %c0_i32, %c0_i32_0 : i32, i32
  }
  func.func @transform_2(%arg0: i32) -> (i32, i32) {
    %c0_i32 = arith.constant 0 : i32
    %c0_i32_0 = arith.constant 0 : i32
    %c0_i32_1 = arith.constant 0 : i32
    return %c0_i32, %c0_i32_0 : i32, i32
  }
  func.func @transform_3(%arg0: i32) -> (i32, i32) {
    %c0_i32 = arith.constant 0 : i32
    %c0_i32_0 = arith.constant 0 : i32
    return %arg0, %c0_i32 : i32, i32
  }
  func.func @transform_4(%arg0: i32) -> (i32, i32) {
    %c0_i32 = arith.constant 0 : i32
    %c0_i32_0 = arith.constant 0 : i32
    %c0_i32_1 = arith.constant 0 : i32
    return %c0_i32, %c0_i32_0 : i32, i32
  }
  func.func @transform_5(%arg0: i32) -> (i32, i32) {
    %c0_i32 = arith.constant 0 : i32
    %c0_i32_0 = arith.constant 0 : i32
    %c0_i32_1 = arith.constant 0 : i32
    return %c0_i32, %c0_i32_0 : i32, i32
  }
  func.func @transform_6(%arg0: i32) -> (i32, i32) {
    %c0_i32 = arith.constant 0 : i32
    %c0_i32_0 = arith.constant 0 : i32
    return %arg0, %c0_i32 : i32, i32
  }
}

module attributes {stable_mosaic.version = 11 : i64} {
  func.func @_attention_kernel(%arg0: i32, %arg1: memref<1x8x96xbf16, #tpu.memory_space<vmem>>, %arg2: memref<1x1x8xf32, #tpu.memory_space<vmem>>, %arg3: memref<1x8x32xbf16, #tpu.memory_space<vmem>>) attributes {dimension_semantics = [#tpu.dimension_semantics<parallel>], iteration_bounds = array<i64: 2>, scalar_prefetch = 0 : i64, scratch_operands = 0 : i64, tpu.core_type = #tpu.core_type<tc>, window_params = [{transform_indices = @transform_0, window_bounds = array<i64: 1, 8, 96>}, {transform_indices = @transform_1, window_bounds = array<i64: 1, 1, 8>}, {transform_indices = @transform_2, window_bounds = array<i64: 1, 8, 32>}]} {
    %c0 = arith.constant 0 : index
    %c0_0 = arith.constant 0 : index
    %c0_1 = arith.constant 0 : index
    %0 = vector.load %arg2[%c0, %c0_0, %c0_1] : memref<1x1x8xf32, #tpu.memory_space<vmem>>, vector<1x1x8xf32>
    %1 = vector.shape_cast %0 : vector<1x1x8xf32> to vector<1x8xf32>
    %c0_2 = arith.constant 0 : index
    %c0_3 = arith.constant 0 : index
    %c0_4 = arith.constant 0 : index
    %2 = vector.load %arg1[%c0_2, %c0_3, %c0_4] : memref<1x8x96xbf16, #tpu.memory_space<vmem>>, vector<1x8x8xbf16>
    %3 = vector.shape_cast %2 : vector<1x8x8xbf16> to vector<8x8xbf16>
    %c0_5 = arith.constant 0 : index
    %c0_6 = arith.constant 0 : index
    %c32 = arith.constant 32 : index
    %4 = vector.load %arg1[%c0_5, %c0_6, %c32] : memref<1x8x96xbf16, #tpu.memory_space<vmem>>, vector<1x8x8xbf16>
    %5 = vector.shape_cast %4 : vector<1x8x8xbf16> to vector<8x8xbf16>
    %c0_7 = arith.constant 0 : index
    %c0_8 = arith.constant 0 : index
    %c64 = arith.constant 64 : index
    %6 = vector.load %arg1[%c0_7, %c0_8, %c64] : memref<1x8x96xbf16, #tpu.memory_space<vmem>>, vector<1x8x8xbf16>
    %7 = vector.shape_cast %6 : vector<1x8x8xbf16> to vector<8x8xbf16>
    %cst = arith.constant dense<0.000000e+00> : vector<8x8xf32>
    %8 = tpu.matmul %3, %5, %cst {dimension_numbers = #tpu.dot_dimension_numbers<[1], [1], [0], [0], [0, 0, 1, 0], [], []>} : vector<8x8xbf16>, vector<8x8xbf16>, vector<8x8xf32> -> vector<8x8xf32>
    %9 = vector.broadcast %1 : vector<1x8xf32> to vector<8x8xf32>
    %10 = arith.addf %8, %9 : vector<8x8xf32>
    %cst_9 = arith.constant dense<0xFF800000> : vector<8xf32>
    %11 = vector.multi_reduction <maximumf>, %10, %cst_9 [1] : vector<8x8xf32> to vector<8xf32>
    %12 = vector.shape_cast %11 : vector<8xf32> to vector<8x1xf32>
    %13 = vector.broadcast %12 : vector<8x1xf32> to vector<8x8xf32>
    %14 = arith.subf %10, %13 : vector<8x8xf32>
    %15 = math.exp %14 : vector<8x8xf32>
    %cst_10 = arith.constant dense<0.000000e+00> : vector<8xf32>
    %16 = vector.multi_reduction <add>, %15, %cst_10 [1] : vector<8x8xf32> to vector<8xf32>
    %17 = vector.shape_cast %16 : vector<8xf32> to vector<8x1xf32>
    %18 = tpu.reciprocal %17 {approx = true} : vector<8x1xf32> -> vector<8x1xf32>
    %19 = vector.broadcast %18 : vector<8x1xf32> to vector<8x8xf32>
    %20 = arith.mulf %15, %19 : vector<8x8xf32>
    %21 = arith.truncf %20 : vector<8x8xf32> to vector<8x8xbf16>
    %cst_11 = arith.constant dense<0.000000e+00> : vector<8x8xf32>
    %22 = tpu.matmul %21, %7, %cst_11 {dimension_numbers = #tpu.dot_dimension_numbers<[1], [0], [0], [1], [0, 0, 1, 1], [], []>} : vector<8x8xbf16>, vector<8x8xbf16>, vector<8x8xf32> -> vector<8x8xf32>
    %c0_12 = arith.constant 0 : index
    %c0_13 = arith.constant 0 : index
    %c8 = arith.constant 8 : index
    %23 = vector.load %arg1[%c0_12, %c0_13, %c8] : memref<1x8x96xbf16, #tpu.memory_space<vmem>>, vector<1x8x8xbf16>
    %24 = vector.shape_cast %23 : vector<1x8x8xbf16> to vector<8x8xbf16>
    %c0_14 = arith.constant 0 : index
    %c0_15 = arith.constant 0 : index
    %c40 = arith.constant 40 : index
    %25 = vector.load %arg1[%c0_14, %c0_15, %c40] : memref<1x8x96xbf16, #tpu.memory_space<vmem>>, vector<1x8x8xbf16>
    %26 = vector.shape_cast %25 : vector<1x8x8xbf16> to vector<8x8xbf16>
    %c0_16 = arith.constant 0 : index
    %c0_17 = arith.constant 0 : index
    %c72 = arith.constant 72 : index
    %27 = vector.load %arg1[%c0_16, %c0_17, %c72] : memref<1x8x96xbf16, #tpu.memory_space<vmem>>, vector<1x8x8xbf16>
    %28 = vector.shape_cast %27 : vector<1x8x8xbf16> to vector<8x8xbf16>
    %cst_18 = arith.constant dense<0.000000e+00> : vector<8x8xf32>
    %29 = tpu.matmul %24, %26, %cst_18 {dimension_numbers = #tpu.dot_dimension_numbers<[1], [1], [0], [0], [0, 0, 1, 0], [], []>} : vector<8x8xbf16>, vector<8x8xbf16>, vector<8x8xf32> -> vector<8x8xf32>
    %30 = vector.broadcast %1 : vector<1x8xf32> to vector<8x8xf32>
    %31 = arith.addf %29, %30 : vector<8x8xf32>
    %cst_19 = arith.constant dense<0xFF800000> : vector<8xf32>
    %32 = vector.multi_reduction <maximumf>, %31, %cst_19 [1] : vector<8x8xf32> to vector<8xf32>
    %33 = vector.shape_cast %32 : vector<8xf32> to vector<8x1xf32>
    %34 = vector.broadcast %33 : vector<8x1xf32> to vector<8x8xf32>
    %35 = arith.subf %31, %34 : vector<8x8xf32>
    %36 = math.exp %35 : vector<8x8xf32>
    %cst_20 = arith.constant dense<0.000000e+00> : vector<8xf32>
    %37 = vector.multi_reduction <add>, %36, %cst_20 [1] : vector<8x8xf32> to vector<8xf32>
    %38 = vector.shape_cast %37 : vector<8xf32> to vector<8x1xf32>
    %39 = tpu.reciprocal %38 {approx = true} : vector<8x1xf32> -> vector<8x1xf32>
    %40 = vector.broadcast %39 : vector<8x1xf32> to vector<8x8xf32>
    %41 = arith.mulf %36, %40 : vector<8x8xf32>
    %42 = arith.truncf %41 : vector<8x8xf32> to vector<8x8xbf16>
    %cst_21 = arith.constant dense<0.000000e+00> : vector<8x8xf32>
    %43 = tpu.matmul %42, %28, %cst_21 {dimension_numbers = #tpu.dot_dimension_numbers<[1], [0], [0], [1], [0, 0, 1, 1], [], []>} : vector<8x8xbf16>, vector<8x8xbf16>, vector<8x8xf32> -> vector<8x8xf32>
    %c0_22 = arith.constant 0 : index
    %c0_23 = arith.constant 0 : index
    %c16 = arith.constant 16 : index
    %44 = vector.load %arg1[%c0_22, %c0_23, %c16] : memref<1x8x96xbf16, #tpu.memory_space<vmem>>, vector<1x8x8xbf16>
    %45 = vector.shape_cast %44 : vector<1x8x8xbf16> to vector<8x8xbf16>
    %c0_24 = arith.constant 0 : index
    %c0_25 = arith.constant 0 : index
    %c48 = arith.constant 48 : index
    %46 = vector.load %arg1[%c0_24, %c0_25, %c48] : memref<1x8x96xbf16, #tpu.memory_space<vmem>>, vector<1x8x8xbf16>
    %47 = vector.shape_cast %46 : vector<1x8x8xbf16> to vector<8x8xbf16>
    %c0_26 = arith.constant 0 : index
    %c0_27 = arith.constant 0 : index
    %c80 = arith.constant 80 : index
    %48 = vector.load %arg1[%c0_26, %c0_27, %c80] : memref<1x8x96xbf16, #tpu.memory_space<vmem>>, vector<1x8x8xbf16>
    %49 = vector.shape_cast %48 : vector<1x8x8xbf16> to vector<8x8xbf16>
    %cst_28 = arith.constant dense<0.000000e+00> : vector<8x8xf32>
    %50 = tpu.matmul %45, %47, %cst_28 {dimension_numbers = #tpu.dot_dimension_numbers<[1], [1], [0], [0], [0, 0, 1, 0], [], []>} : vector<8x8xbf16>, vector<8x8xbf16>, vector<8x8xf32> -> vector<8x8xf32>
    %51 = vector.broadcast %1 : vector<1x8xf32> to vector<8x8xf32>
    %52 = arith.addf %50, %51 : vector<8x8xf32>
    %cst_29 = arith.constant dense<0xFF800000> : vector<8xf32>
    %53 = vector.multi_reduction <maximumf>, %52, %cst_29 [1] : vector<8x8xf32> to vector<8xf32>
    %54 = vector.shape_cast %53 : vector<8xf32> to vector<8x1xf32>
    %55 = vector.broadcast %54 : vector<8x1xf32> to vector<8x8xf32>
    %56 = arith.subf %52, %55 : vector<8x8xf32>
    %57 = math.exp %56 : vector<8x8xf32>
    %cst_30 = arith.constant dense<0.000000e+00> : vector<8xf32>
    %58 = vector.multi_reduction <add>, %57, %cst_30 [1] : vector<8x8xf32> to vector<8xf32>
    %59 = vector.shape_cast %58 : vector<8xf32> to vector<8x1xf32>
    %60 = tpu.reciprocal %59 {approx = true} : vector<8x1xf32> -> vector<8x1xf32>
    %61 = vector.broadcast %60 : vector<8x1xf32> to vector<8x8xf32>
    %62 = arith.mulf %57, %61 : vector<8x8xf32>
    %63 = arith.truncf %62 : vector<8x8xf32> to vector<8x8xbf16>
    %cst_31 = arith.constant dense<0.000000e+00> : vector<8x8xf32>
    %64 = tpu.matmul %63, %49, %cst_31 {dimension_numbers = #tpu.dot_dimension_numbers<[1], [0], [0], [1], [0, 0, 1, 1], [], []>} : vector<8x8xbf16>, vector<8x8xbf16>, vector<8x8xf32> -> vector<8x8xf32>
    %c0_32 = arith.constant 0 : index
    %c0_33 = arith.constant 0 : index
    %c24 = arith.constant 24 : index
    %65 = vector.load %arg1[%c0_32, %c0_33, %c24] : memref<1x8x96xbf16, #tpu.memory_space<vmem>>, vector<1x8x8xbf16>
    %66 = vector.shape_cast %65 : vector<1x8x8xbf16> to vector<8x8xbf16>
    %c0_34 = arith.constant 0 : index
    %c0_35 = arith.constant 0 : index
    %c56 = arith.constant 56 : index
    %67 = vector.load %arg1[%c0_34, %c0_35, %c56] : memref<1x8x96xbf16, #tpu.memory_space<vmem>>, vector<1x8x8xbf16>
    %68 = vector.shape_cast %67 : vector<1x8x8xbf16> to vector<8x8xbf16>
    %c0_36 = arith.constant 0 : index
    %c0_37 = arith.constant 0 : index
    %c88 = arith.constant 88 : index
    %69 = vector.load %arg1[%c0_36, %c0_37, %c88] : memref<1x8x96xbf16, #tpu.memory_space<vmem>>, vector<1x8x8xbf16>
    %70 = vector.shape_cast %69 : vector<1x8x8xbf16> to vector<8x8xbf16>
    %cst_38 = arith.constant dense<0.000000e+00> : vector<8x8xf32>
    %71 = tpu.matmul %66, %68, %cst_38 {dimension_numbers = #tpu.dot_dimension_numbers<[1], [1], [0], [0], [0, 0, 1, 0], [], []>} : vector<8x8xbf16>, vector<8x8xbf16>, vector<8x8xf32> -> vector<8x8xf32>
    %72 = vector.broadcast %1 : vector<1x8xf32> to vector<8x8xf32>
    %73 = arith.addf %71, %72 : vector<8x8xf32>
    %cst_39 = arith.constant dense<0xFF800000> : vector<8xf32>
    %74 = vector.multi_reduction <maximumf>, %73, %cst_39 [1] : vector<8x8xf32> to vector<8xf32>
    %75 = vector.shape_cast %74 : vector<8xf32> to vector<8x1xf32>
    %76 = vector.broadcast %75 : vector<8x1xf32> to vector<8x8xf32>
    %77 = arith.subf %73, %76 : vector<8x8xf32>
    %78 = math.exp %77 : vector<8x8xf32>
    %cst_40 = arith.constant dense<0.000000e+00> : vector<8xf32>
    %79 = vector.multi_reduction <add>, %78, %cst_40 [1] : vector<8x8xf32> to vector<8xf32>
    %80 = vector.shape_cast %79 : vector<8xf32> to vector<8x1xf32>
    %81 = tpu.reciprocal %80 {approx = true} : vector<8x1xf32> -> vector<8x1xf32>
    %82 = vector.broadcast %81 : vector<8x1xf32> to vector<8x8xf32>
    %83 = arith.mulf %78, %82 : vector<8x8xf32>
    %84 = arith.truncf %83 : vector<8x8xf32> to vector<8x8xbf16>
    %cst_41 = arith.constant dense<0.000000e+00> : vector<8x8xf32>
    %85 = tpu.matmul %84, %70, %cst_41 {dimension_numbers = #tpu.dot_dimension_numbers<[1], [0], [0], [1], [0, 0, 1, 1], [], []>} : vector<8x8xbf16>, vector<8x8xbf16>, vector<8x8xf32> -> vector<8x8xf32>
    %86 = tpu.concatenate %22, %43, %64, %85 in 1 : vector<8x8xf32>, vector<8x8xf32>, vector<8x8xf32>, vector<8x8xf32> -> vector<8x32xf32>
    %87 = arith.truncf %86 : vector<8x32xf32> to vector<8x32xbf16>
    %c0_42 = arith.constant 0 : index
    %c0_43 = arith.constant 0 : index
    %c0_44 = arith.constant 0 : index
    %88 = vector.load %arg3[%c0_42, %c0_43, %c0_44] : memref<1x8x32xbf16, #tpu.memory_space<vmem>>, vector<1x8x32xbf16>
    %89 = vector.shape_cast %88 : vector<1x8x32xbf16> to vector<8x32xbf16>
    %90 = vector.shape_cast %87 : vector<8x32xbf16> to vector<1x8x32xbf16>
    tpu.vector_store %arg3[%c0_42, %c0_43, %c0_44], %90 {strides = array<i32>} : memref<1x8x32xbf16, #tpu.memory_space<vmem>>, vector<1x8x32xbf16>,
    return
  }
  func.func @transform_0(%arg0: i32) -> (i32, i32, i32) {
    %c0_i32 = arith.constant 0 : i32
    %c0_i32_0 = arith.constant 0 : i32
    %c0_i32_1 = arith.constant 0 : i32
    return %arg0, %c0_i32, %c0_i32_0 : i32, i32, i32
  }
  func.func @transform_1(%arg0: i32) -> (i32, i32, i32) {
    %c0_i32 = arith.constant 0 : i32
    %c0_i32_0 = arith.constant 0 : i32
    %c0_i32_1 = arith.constant 0 : i32
    return %arg0, %c0_i32, %c0_i32_0 : i32, i32, i32
  }
  func.func @transform_2(%arg0: i32) -> (i32, i32, i32) {
    %c0_i32 = arith.constant 0 : i32
    %c0_i32_0 = arith.constant 0 : i32
    %c0_i32_1 = arith.constant 0 : i32
    return %arg0, %c0_i32, %c0_i32_0 : i32, i32, i32
  }
}

module attributes {stable_mosaic.version = 11 : i64} {
  func.func @_linear_res_ln_kernel(%arg0: i32, %arg1: memref<8x128xbf16, #tpu.memory_space<vmem>>, %arg2: memref<128x32xbf16, #tpu.memory_space<vmem>>, %arg3: memref<1x32xf32, #tpu.memory_space<vmem>>, %arg4: memref<8x32xf32, #tpu.memory_space<vmem>>, %arg5: memref<1x32xf32, #tpu.memory_space<vmem>>, %arg6: memref<1x32xf32, #tpu.memory_space<vmem>>, %arg7: memref<8x32xf32, #tpu.memory_space<vmem>>) attributes {dimension_semantics = [#tpu.dimension_semantics<parallel>], iteration_bounds = array<i64: 2>, scalar_prefetch = 0 : i64, scratch_operands = 0 : i64, tpu.core_type = #tpu.core_type<tc>, window_params = [{transform_indices = @transform_0, window_bounds = array<i64: 8, 128>}, {pipeline_mode = #tpu.pipeline_mode<synchronous>, transform_indices = @transform_1, window_bounds = array<i64: 128, 32>}, {pipeline_mode = #tpu.pipeline_mode<synchronous>, transform_indices = @transform_2, window_bounds = array<i64: 1, 32>}, {transform_indices = @transform_3, window_bounds = array<i64: 8, 32>}, {pipeline_mode = #tpu.pipeline_mode<synchronous>, transform_indices = @transform_4, window_bounds = array<i64: 1, 32>}, {pipeline_mode = #tpu.pipeline_mode<synchronous>, transform_indices = @transform_5, window_bounds = array<i64: 1, 32>}, {transform_indices = @transform_6, window_bounds = array<i64: 8, 32>}]} {
    %c0 = arith.constant 0 : index
    %c0_0 = arith.constant 0 : index
    %0 = vector.load %arg1[%c0, %c0_0] : memref<8x128xbf16, #tpu.memory_space<vmem>>, vector<8x128xbf16>
    %c0_1 = arith.constant 0 : index
    %c0_2 = arith.constant 0 : index
    %1 = vector.load %arg2[%c0_1, %c0_2] : memref<128x32xbf16, #tpu.memory_space<vmem>>, vector<128x32xbf16>
    %cst = arith.constant dense<0.000000e+00> : vector<8x32xf32>
    %2 = tpu.matmul %0, %1, %cst {dimension_numbers = #tpu.dot_dimension_numbers<[1], [0], [0], [1], [0, 0, 1, 1], [], []>} : vector<8x128xbf16>, vector<128x32xbf16>, vector<8x32xf32> -> vector<8x32xf32>
    %c0_3 = arith.constant 0 : index
    %c0_4 = arith.constant 0 : index
    %3 = vector.load %arg4[%c0_3, %c0_4] : memref<8x32xf32, #tpu.memory_space<vmem>>, vector<8x32xf32>
    %4 = arith.addf %3, %2 : vector<8x32xf32>
    %c0_5 = arith.constant 0 : index
    %c0_6 = arith.constant 0 : index
    %5 = vector.load %arg3[%c0_5, %c0_6] : memref<1x32xf32, #tpu.memory_space<vmem>>, vector<1x32xf32>
    %6 = vector.broadcast %5 : vector<1x32xf32> to vector<8x32xf32>
    %7 = arith.addf %4, %6 : vector<8x32xf32>
    %c0_7 = arith.constant 0 : index
    %c0_8 = arith.constant 0 : index
    %8 = vector.load %arg5[%c0_7, %c0_8] : memref<1x32xf32, #tpu.memory_space<vmem>>, vector<1x32xf32>
    %c0_9 = arith.constant 0 : index
    %c0_10 = arith.constant 0 : index
    %9 = vector.load %arg6[%c0_9, %c0_10] : memref<1x32xf32, #tpu.memory_space<vmem>>, vector<1x32xf32>
    %cst_11 = arith.constant dense<0.000000e+00> : vector<8xf32>
    %10 = vector.multi_reduction <add>, %7, %cst_11 [1] : vector<8x32xf32> to vector<8xf32>
    %11 = vector.shape_cast %10 : vector<8xf32> to vector<8x1xf32>
    %cst_12 = arith.constant 3.200000e+01 : f32
    %12 = vector.broadcast %cst_12 : f32 to vector<8x1xf32>
    %13 = arith.divf %11, %12 : vector<8x1xf32>
    %14 = vector.broadcast %13 : vector<8x1xf32> to vector<8x32xf32>
    %15 = arith.subf %7, %14 : vector<8x32xf32>
    %16 = arith.mulf %15, %15 : vector<8x32xf32>
    %cst_13 = arith.constant dense<0.000000e+00> : vector<8xf32>
    %17 = vector.multi_reduction <add>, %16, %cst_13 [1] : vector<8x32xf32> to vector<8xf32>
    %18 = vector.shape_cast %17 : vector<8xf32> to vector<8x1xf32>
    %cst_14 = arith.constant 3.200000e+01 : f32
    %19 = vector.broadcast %cst_14 : f32 to vector<8x1xf32>
    %20 = arith.divf %18, %19 : vector<8x1xf32>
    %21 = vector.broadcast %13 : vector<8x1xf32> to vector<8x32xf32>
    %22 = arith.subf %7, %21 : vector<8x32xf32>
    %cst_15 = arith.constant 9.99999996E-13 : f32
    %23 = vector.broadcast %cst_15 : f32 to vector<8x1xf32>
    %24 = arith.addf %20, %23 : vector<8x1xf32>
    %25 = math.rsqrt %24 : vector<8x1xf32>
    %26 = vector.broadcast %25 : vector<8x1xf32> to vector<8x32xf32>
    %27 = arith.mulf %22, %26 : vector<8x32xf32>
    %28 = vector.broadcast %8 : vector<1x32xf32> to vector<8x32xf32>
    %29 = arith.mulf %28, %27 : vector<8x32xf32>
    %30 = vector.broadcast %9 : vector<1x32xf32> to vector<8x32xf32>
    %31 = arith.addf %29, %30 : vector<8x32xf32>
    %c0_16 = arith.constant 0 : index
    %c0_17 = arith.constant 0 : index
    %32 = vector.load %arg7[%c0_16, %c0_17] : memref<8x32xf32, #tpu.memory_space<vmem>>, vector<8x32xf32>
    tpu.vector_store %arg7[%c0_16, %c0_17], %31 {strides = array<i32>} : memref<8x32xf32, #tpu.memory_space<vmem>>, vector<8x32xf32>,
    return
  }
  func.func @transform_0(%arg0: i32) -> (i32, i32) {
    %c0_i32 = arith.constant 0 : i32
    %c0_i32_0 = arith.constant 0 : i32
    return %arg0, %c0_i32 : i32, i32
  }
  func.func @transform_1(%arg0: i32) -> (i32, i32) {
    %c0_i32 = arith.constant 0 : i32
    %c0_i32_0 = arith.constant 0 : i32
    %c0_i32_1 = arith.constant 0 : i32
    return %c0_i32, %c0_i32_0 : i32, i32
  }
  func.func @transform_2(%arg0: i32) -> (i32, i32) {
    %c0_i32 = arith.constant 0 : i32
    %c0_i32_0 = arith.constant 0 : i32
    %c0_i32_1 = arith.constant 0 : i32
    return %c0_i32, %c0_i32_0 : i32, i32
  }
  func.func @transform_3(%arg0: i32) -> (i32, i32) {
    %c0_i32 = arith.constant 0 : i32
    %c0_i32_0 = arith.constant 0 : i32
    return %arg0, %c0_i32 : i32, i32
  }
  func.func @transform_4(%arg0: i32) -> (i32, i32) {
    %c0_i32 = arith.constant 0 : i32
    %c0_i32_0 = arith.constant 0 : i32
    %c0_i32_1 = arith.constant 0 : i32
    return %c0_i32, %c0_i32_0 : i32, i32
  }
  func.func @transform_5(%arg0: i32) -> (i32, i32) {
    %c0_i32 = arith.constant 0 : i32
    %c0_i32_0 = arith.constant 0 : i32
    %c0_i32_1 = arith.constant 0 : i32
    return %c0_i32, %c0_i32_0 : i32, i32
  }
  func.func @transform_6(%arg0: i32) -> (i32, i32) {
    %c0_i32 = arith.constant 0 : i32
    %c0_i32_0 = arith.constant 0 : i32
    return %arg0, %c0_i32 : i32, i32
  }
}

module attributes {stable_mosaic.version = 11 : i64} {
  func.func @_linear_res_ln_kernel(%arg0: i32, %arg1: memref<8x128xbf16, #tpu.memory_space<vmem>>, %arg2: memref<128x32xbf16, #tpu.memory_space<vmem>>, %arg3: memref<1x32xf32, #tpu.memory_space<vmem>>, %arg4: memref<8x32xf32, #tpu.memory_space<vmem>>, %arg5: memref<1x32xf32, #tpu.memory_space<vmem>>, %arg6: memref<1x32xf32, #tpu.memory_space<vmem>>, %arg7: memref<8x32xf32, #tpu.memory_space<vmem>>) attributes {dimension_semantics = [#tpu.dimension_semantics<parallel>], iteration_bounds = array<i64: 2>, scalar_prefetch = 0 : i64, scratch_operands = 0 : i64, tpu.core_type = #tpu.core_type<tc>, window_params = [{transform_indices = @transform_0, window_bounds = array<i64: 8, 128>}, {pipeline_mode = #tpu.pipeline_mode<synchronous>, transform_indices = @transform_1, window_bounds = array<i64: 128, 32>}, {pipeline_mode = #tpu.pipeline_mode<synchronous>, transform_indices = @transform_2, window_bounds = array<i64: 1, 32>}, {transform_indices = @transform_3, window_bounds = array<i64: 8, 32>}, {pipeline_mode = #tpu.pipeline_mode<synchronous>, transform_indices = @transform_4, window_bounds = array<i64: 1, 32>}, {pipeline_mode = #tpu.pipeline_mode<synchronous>, transform_indices = @transform_5, window_bounds = array<i64: 1, 32>}, {transform_indices = @transform_6, window_bounds = array<i64: 8, 32>}]} {
    %c0 = arith.constant 0 : index
    %c0_0 = arith.constant 0 : index
    %0 = vector.load %arg1[%c0, %c0_0] : memref<8x128xbf16, #tpu.memory_space<vmem>>, vector<8x128xbf16>
    %c0_1 = arith.constant 0 : index
    %c0_2 = arith.constant 0 : index
    %1 = vector.load %arg2[%c0_1, %c0_2] : memref<128x32xbf16, #tpu.memory_space<vmem>>, vector<128x32xbf16>
    %cst = arith.constant dense<0.000000e+00> : vector<8x32xf32>
    %2 = tpu.matmul %0, %1, %cst {dimension_numbers = #tpu.dot_dimension_numbers<[1], [0], [0], [1], [0, 0, 1, 1], [], []>} : vector<8x128xbf16>, vector<128x32xbf16>, vector<8x32xf32> -> vector<8x32xf32>
    %c0_3 = arith.constant 0 : index
    %c0_4 = arith.constant 0 : index
    %3 = vector.load %arg4[%c0_3, %c0_4] : memref<8x32xf32, #tpu.memory_space<vmem>>, vector<8x32xf32>
    %4 = arith.addf %3, %2 : vector<8x32xf32>
    %c0_5 = arith.constant 0 : index
    %c0_6 = arith.constant 0 : index
    %5 = vector.load %arg3[%c0_5, %c0_6] : memref<1x32xf32, #tpu.memory_space<vmem>>, vector<1x32xf32>
    %6 = vector.broadcast %5 : vector<1x32xf32> to vector<8x32xf32>
    %7 = arith.addf %4, %6 : vector<8x32xf32>
    %c0_7 = arith.constant 0 : index
    %c0_8 = arith.constant 0 : index
    %8 = vector.load %arg5[%c0_7, %c0_8] : memref<1x32xf32, #tpu.memory_space<vmem>>, vector<1x32xf32>
    %c0_9 = arith.constant 0 : index
    %c0_10 = arith.constant 0 : index
    %9 = vector.load %arg6[%c0_9, %c0_10] : memref<1x32xf32, #tpu.memory_space<vmem>>, vector<1x32xf32>
    %cst_11 = arith.constant dense<0.000000e+00> : vector<8xf32>
    %10 = vector.multi_reduction <add>, %7, %cst_11 [1] : vector<8x32xf32> to vector<8xf32>
    %11 = vector.shape_cast %10 : vector<8xf32> to vector<8x1xf32>
    %cst_12 = arith.constant 3.200000e+01 : f32
    %12 = vector.broadcast %cst_12 : f32 to vector<8x1xf32>
    %13 = arith.divf %11, %12 : vector<8x1xf32>
    %14 = vector.broadcast %13 : vector<8x1xf32> to vector<8x32xf32>
    %15 = arith.subf %7, %14 : vector<8x32xf32>
    %16 = arith.mulf %15, %15 : vector<8x32xf32>
    %cst_13 = arith.constant dense<0.000000e+00> : vector<8xf32>
    %17 = vector.multi_reduction <add>, %16, %cst_13 [1] : vector<8x32xf32> to vector<8xf32>
    %18 = vector.shape_cast %17 : vector<8xf32> to vector<8x1xf32>
    %cst_14 = arith.constant 3.200000e+01 : f32
    %19 = vector.broadcast %cst_14 : f32 to vector<8x1xf32>
    %20 = arith.divf %18, %19 : vector<8x1xf32>
    %21 = vector.broadcast %13 : vector<8x1xf32> to vector<8x32xf32>
    %22 = arith.subf %7, %21 : vector<8x32xf32>
    %cst_15 = arith.constant 9.99999996E-13 : f32
    %23 = vector.broadcast %cst_15 : f32 to vector<8x1xf32>
    %24 = arith.addf %20, %23 : vector<8x1xf32>
    %25 = math.rsqrt %24 : vector<8x1xf32>
    %26 = vector.broadcast %25 : vector<8x1xf32> to vector<8x32xf32>
    %27 = arith.mulf %22, %26 : vector<8x32xf32>
    %28 = vector.broadcast %8 : vector<1x32xf32> to vector<8x32xf32>
    %29 = arith.mulf %28, %27 : vector<8x32xf32>
    %30 = vector.broadcast %9 : vector<1x32xf32> to vector<8x32xf32>
    %31 = arith.addf %29, %30 : vector<8x32xf32>
    %c0_16 = arith.constant 0 : index
    %c0_17 = arith.constant 0 : index
    %32 = vector.load %arg7[%c0_16, %c0_17] : memref<8x32xf32, #tpu.memory_space<vmem>>, vector<8x32xf32>
    tpu.vector_store %arg7[%c0_16, %c0_17], %31 {strides = array<i32>} : memref<8x32xf32, #tpu.memory_space<vmem>>, vector<8x32xf32>,
    return
  }
  func.func @transform_0(%arg0: i32) -> (i32, i32) {
    %c0_i32 = arith.constant 0 : i32
    %c0_i32_0 = arith.constant 0 : i32
    return %arg0, %c0_i32 : i32, i32
  }
  func.func @transform_1(%arg0: i32) -> (i32, i32) {
    %c0_i32 = arith.constant 0 : i32
    %c0_i32_0 = arith.constant 0 : i32
    %c0_i32_1 = arith.constant 0 : i32
    return %c0_i32, %c0_i32_0 : i32, i32
  }
  func.func @transform_2(%arg0: i32) -> (i32, i32) {
    %c0_i32 = arith.constant 0 : i32
    %c0_i32_0 = arith.constant 0 : i32
    %c0_i32_1 = arith.constant 0 : i32
    return %c0_i32, %c0_i32_0 : i32, i32
  }
  func.func @transform_3(%arg0: i32) -> (i32, i32) {
    %c0_i32 = arith.constant 0 : i32
    %c0_i32_0 = arith.constant 0 : i32
    return %arg0, %c0_i32 : i32, i32
  }
  func.func @transform_4(%arg0: i32) -> (i32, i32) {
    %c0_i32 = arith.constant 0 : i32
    %c0_i32_0 = arith.constant 0 : i32
    %c0_i32_1 = arith.constant 0 : i32
    return %c0_i32, %c0_i32_0 : i32, i32
  }
  func.func @transform_5(%arg0: i32) -> (i32, i32) {
    %c0_i32 = arith.constant 0 : i32
    %c0_i32_0 = arith.constant 0 : i32
    %c0_i32_1 = arith.constant 0 : i32
    return %c0_i32, %c0_i32_0 : i32, i32
  }
  func.func @transform_6(%arg0: i32) -> (i32, i32) {
    %c0_i32 = arith.constant 0 : i32
    %c0_i32_0 = arith.constant 0 : i32
    return %arg0, %c0_i32 : i32, i32
  }
}

module attributes {stable_mosaic.version = 11 : i64} {
  func.func @_linear_kernel(%arg0: i32, %arg1: i32, %arg2: memref<8x32xf32, #tpu.memory_space<vmem>>, %arg3: memref<32x128xbf16, #tpu.memory_space<vmem>>, %arg4: memref<1x128xf32, #tpu.memory_space<vmem>>, %arg5: memref<8x128xbf16, #tpu.memory_space<vmem>>) attributes {dimension_semantics = [#tpu.dimension_semantics<parallel>, #tpu.dimension_semantics<parallel>], iteration_bounds = array<i64: 2, 1>, scalar_prefetch = 0 : i64, scratch_operands = 0 : i64, tpu.core_type = #tpu.core_type<tc>, window_params = [{transform_indices = @transform_0, window_bounds = array<i64: 8, 32>}, {transform_indices = @transform_1, window_bounds = array<i64: 32, 128>}, {transform_indices = @transform_2, window_bounds = array<i64: 1, 128>}, {transform_indices = @transform_3, window_bounds = array<i64: 8, 128>}]} {
    %c0 = arith.constant 0 : index
    %c0_0 = arith.constant 0 : index
    %0 = vector.load %arg2[%c0, %c0_0] : memref<8x32xf32, #tpu.memory_space<vmem>>, vector<8x32xf32>
    %1 = arith.truncf %0 : vector<8x32xf32> to vector<8x32xbf16>
    %c0_1 = arith.constant 0 : index
    %c0_2 = arith.constant 0 : index
    %2 = vector.load %arg3[%c0_1, %c0_2] : memref<32x128xbf16, #tpu.memory_space<vmem>>, vector<32x128xbf16>
    %cst = arith.constant dense<0.000000e+00> : vector<8x128xf32>
    %3 = tpu.matmul %1, %2, %cst {dimension_numbers = #tpu.dot_dimension_numbers<[1], [0], [0], [1], [0, 0, 1, 1], [], []>} : vector<8x32xbf16>, vector<32x128xbf16>, vector<8x128xf32> -> vector<8x128xf32>
    %c0_3 = arith.constant 0 : index
    %c0_4 = arith.constant 0 : index
    %4 = vector.load %arg4[%c0_3, %c0_4] : memref<1x128xf32, #tpu.memory_space<vmem>>, vector<1x128xf32>
    %5 = vector.broadcast %4 : vector<1x128xf32> to vector<8x128xf32>
    %6 = arith.addf %3, %5 : vector<8x128xf32>
    %cst_5 = arith.constant 5.000000e-01 : f32
    %7 = vector.broadcast %cst_5 : f32 to vector<8x128xf32>
    %8 = arith.mulf %7, %6 : vector<8x128xf32>
    %cst_6 = arith.constant 4.471500e-02 : f32
    %9 = vector.broadcast %cst_6 : f32 to vector<8x128xf32>
    %10 = arith.mulf %9, %6 : vector<8x128xf32>
    %11 = arith.mulf %10, %6 : vector<8x128xf32>
    %12 = arith.mulf %11, %6 : vector<8x128xf32>
    %13 = arith.addf %6, %12 : vector<8x128xf32>
    %cst_7 = arith.constant 0.797884583 : f32
    %14 = vector.broadcast %cst_7 : f32 to vector<8x128xf32>
    %15 = arith.mulf %14, %13 : vector<8x128xf32>
    %16 = math.tanh %15 : vector<8x128xf32>
    %cst_8 = arith.constant 1.000000e+00 : f32
    %17 = vector.broadcast %cst_8 : f32 to vector<8x128xf32>
    %18 = arith.addf %17, %16 : vector<8x128xf32>
    %19 = arith.mulf %8, %18 : vector<8x128xf32>
    %20 = arith.truncf %19 : vector<8x128xf32> to vector<8x128xbf16>
    %c0_9 = arith.constant 0 : index
    %c0_10 = arith.constant 0 : index
    %21 = vector.load %arg5[%c0_9, %c0_10] : memref<8x128xbf16, #tpu.memory_space<vmem>>, vector<8x128xbf16>
    tpu.vector_store %arg5[%c0_9, %c0_10], %20 {strides = array<i32>} : memref<8x128xbf16, #tpu.memory_space<vmem>>, vector<8x128xbf16>,
    return
  }
  func.func @transform_0(%arg0: i32, %arg1: i32) -> (i32, i32) {
    %c0_i32 = arith.constant 0 : i32
    %c0_i32_0 = arith.constant 0 : i32
    return %arg0, %c0_i32 : i32, i32
  }
  func.func @transform_1(%arg0: i32, %arg1: i32) -> (i32, i32) {
    %c0_i32 = arith.constant 0 : i32
    %c0_i32_0 = arith.constant 0 : i32
    return %c0_i32, %arg1 : i32, i32
  }
  func.func @transform_2(%arg0: i32, %arg1: i32) -> (i32, i32) {
    %c0_i32 = arith.constant 0 : i32
    %c0_i32_0 = arith.constant 0 : i32
    return %c0_i32, %arg1 : i32, i32
  }
  func.func @transform_3(%arg0: i32, %arg1: i32) -> (i32, i32) {
    %c0_i32 = arith.constant 0 : i32
    return %arg0, %arg1 : i32, i32
  }
}

</mosaic_0001>

<bundles_post_ra>
// kernel: transformer_forward.12
= control target key start
LH: loop header
LB: loop body
LE: loop exit
PB: predicated region body
PF: predicated region fallthrough
CT: control target
= control target key end

     0   :  { %s489_s12 = smov 0   ;;  %s491_s13 = smov 0   ;;  %s531_s0 = inlined_call_operand.vmem [shape: f32[16,32], index: 0, kind: input, shape index: {}]   ;;  %s532_s1 = inlined_call_operand.vmem [shape: bf16[32,96], index: 1, kind: input, shape index: {}]   ;;  %s533_s2 = inlined_call_operand.vmem [shape: f32[1,96], index: 2, kind: input, shape index: {}]   ;;  %s534_s3 = inlined_call_operand.vmem [shape: bf16[16,96], index: 3, kind: output, shape index: {}]  }
   0x1   :  { %s493_s14 = smov 0  }
   0x2 LB: > { %s25_s15 = sadd.s32 1, %s461_s13  ;;  %p395_p0 = scmp.ge.s32.totalorder %s465_s14, 1  ;;  %s465_s14 = sphi %s493_s14, %s13_s14   ;;  %s461_s13 = sphi %s491_s13, %s536_s13   ;;  %s457_s12 = sphi %s489_s12, %s535_s12  }
   0x3   : > { %p27_p1 = scmp.ge.s32.totalorder %s25_s15, 2  ;;  %p167_p2 = scmp.lt.s32.totalorder %s465_s14, 3 }
   0x5   : > { %s538_s15 = smov (%p27_p1, %s25_s15), 0  ;;  %p168_p3 = pnand %p395_p0, %p167_p2 }
   0x6   : > { %v441_v0 = vld [vmem:[%s532_s1] sm:$0xff] (!%p168_p3)   ;;  %v467_v1 = vmov (!%p168_p3), 0.0   ;;  %v442_v2 = vld [vmem:[%s532_s1 + $0x8] sm:$0xff] (!%p168_p3)   ;;  %vm468_vm0 = vmmov (!%p168_p3), 0   ;;  %p199_p4 = scmp.lt.s32.totalorder (!%p168_p3), %s457_s12, 1  ;;  %vm243_vm1 = vcmask (!%p168_p3), 261120  }
   0x7   : > { %171 = sbr.rel (%p168_p3) target bundleno = 237 (0xed), region = 32  ;;  %407 = vmatprep.subr.bf16.mxu0 (!%p168_p3), %v467_v1  ;;  %411 = vmatprep.mubr.msk.bf16.mxu0 (!%p168_p3), %vm468_vm0, %v467_v1  ;;  %v398_v5 = vld [vmem:[%s533_s2] ss:$0 sm:$0xff] (!%p168_p3)  ;;  %vm288_vm2 = vcmask (!%p168_p3), 781312  }
   0x8   : > { %408 = vmatpush3.bf16.msra.mxu0 (!%p168_p3), %v441_v0 }
   0x9   : > { %409 = vmatprep.subr.bf16.mxu0 (!%p168_p3), %v467_v1 }
   0xc   : > { %410 = vmatpush3.bf16.msra.mxu0 (!%p168_p3), %v442_v2 }
   0xe   : > { %s540_s12 = smov (!%p199_p4, %s457_s12), 1 }
   0xf   : > { %s396_s20 = sshll.u32 %s540_s12, 3  ;;  %s397_s26 = sshll.u32 %s540_s12, 2 }
  0x10   : > { %s202_s23 = scalar_lea.vmem %s531_s0, %s396_s20  ;;  %s216_s29 = scalar_lea.vmem %s534_s3, %s397_s26 }
  0x11   : > { %v218_v3 = vld [vmem:[%s202_s23] sm:$0xff] }
  0x12   : > { %v219_v4 = vpack.c.bf16 %v218_v3, %v218_v3 }
  0x14   : > { %412 = vmatmul.mubr.msk.bf16.vlgmr.msra.gmra.mrb[0].mxu0 %vm243_vm1, %v219_v4 }
  0xe7   : > { %v281_v6 = vpop.f32.mrb[0].mxu0 }
  0xe8   : > { %v282_v7 = vadd.f32 %v398_v5, %v281_v6  ;;  %v413_v8 = vpop.f32.mrb[1].mxu0 }
  0xe9   : > { %v284_v9 = vpop.f32.mrb[2].mxu0 }
  0xea   : > { %v287_v10 = vpack.c.bf16 %v282_v7, %v282_v7  ;;  %v414_v11 = vpop.f32.mrb[3].mxu0 }
  0xec   : > { %289 = vst.msk [vmem:[%s216_s29] sm:$0xf] %vm288_vm2, %v287_v10 }
  0xed PF: > { %s13_s14 = sadd.s32 1, %s465_s14   ;;  %s535_s12 = smov %s461_s13 }
  0xee   : > { %p10_p5 = scmp.ge.s32.totalorder %s13_s14, 4   ;;  %s536_s13 = smov %s538_s15 }
  0xf0   :  { %12 = sbr.rel (!%p10_p5) target bundleno = 2 (0x2), region = 68 }

// kernel: transformer_forward.11
= control target key start
LH: loop header
LB: loop body
LE: loop exit
PB: predicated region body
PF: predicated region fallthrough
CT: control target
= control target key end

     0   :  { %s453_s15 = smov 0   ;;  %s455_s16 = smov 0   ;;  %s498_s0 = inlined_call_operand.vmem [shape: f32[2,8,32], index: 0, kind: input, shape index: {}]   ;;  %s499_s1 = inlined_call_operand.vmem [shape: f32[8,32], index: 1, kind: input, shape index: {}]   ;;  %s500_s2 = inlined_call_operand.vmem [shape: f32[1,32], index: 2, kind: input, shape index: {}]   ;;  %s501_s3 = inlined_call_operand.vmem [shape: f32[1,32], index: 3, kind: input, shape index: {}]   ;;  %s502_s4 = inlined_call_operand.vmem [shape: f32[2,8,32], index: 4, kind: output, shape index: {}]  }
   0x1   :  { %s457_s17 = smov 0  }
   0x2 LB: > { %s26_s18 = sadd.s32 1, %s422_s16  ;;  %p371_p0 = scmp.ge.s32.totalorder %s426_s17, 1  ;;  %s426_s17 = sphi %s457_s17, %s14_s17   ;;  %s422_s16 = sphi %s455_s16, %s504_s16   ;;  %s418_s15 = sphi %s453_s15, %s503_s15  }
   0x3   : > { %p28_p1 = scmp.ge.s32.totalorder %s26_s18, 2  ;;  %p189_p2 = scmp.lt.s32.totalorder %s426_s17, 3 }
   0x5   : > { %s506_s18 = smov (%p28_p1, %s26_s18), 0  ;;  %p190_p3 = pnand %p371_p0, %p189_p2 }
   0x6   : > { %p223_p4 = scmp.lt.s32.totalorder (!%p190_p3), %s418_s15, 1  ;;  %v242_v0 = vld [vmem:[%s499_s1] sm:$0xff] (!%p190_p3)  ;;  %vm246_vm0 = vcmask (!%p190_p3), 261120  }
   0x7   : > { %193 = sbr.rel (%p190_p3) target bundleno = 334 (0x14e), region = 36  ;;  %v374_v13 = vld [vmem:[%s500_s2] ss:$0 sm:$0xff] (!%p190_p3) }
   0x8   : > { %v375_v15 = vld [vmem:[%s501_s3] ss:$0 sm:$0xff] (!%p190_p3) }
   0xe   : > { %s508_s15 = smov (!%p223_p4, %s418_s15), 1 }
   0xf   : > { %s372_s19 = sshll.u32 %s508_s15, 3 }
  0x10   : > { %s229_s24 = scalar_lea.vmem %s498_s0, %s372_s19  ;;  %s240_s5 = scalar_lea.vmem %s502_s4, %s372_s19 }
  0x11   : > { %v241_v1 = vld [vmem:[%s229_s24] sm:$0xff] }
  0x12   : > { %v243_v2 = vadd.f32 %v242_v0, %v241_v1 }
  0x14   : > { %v247_v3 = vsel %vm246_vm0, %v243_v2, 0.0 }
  0x15   : > { %248 = vadd.xlane.f32.xlu0 %v247_v3 }
  0xa2   : > { %v249_v4 = vpop.xlane.xlu0 %248 }
  0xa3   : > { %v251_v5 = vmul.f32 0.03125, %v249_v4 }
  0xa5   : > { %v252_v6 = vsub.f32 %v243_v2, %v251_v5 }
  0xa7   : > { %v253_v7 = vmul.f32 %v252_v6, %v252_v6 }
  0xa9   : > { %v254_v8 = vsel %vm246_vm0, %v253_v7, 0.0 }
  0xaa   : > { %255 = vadd.xlane.f32.xlu0 %v254_v8 }
 0x137   : > { %v256_v9 = vpop.xlane.xlu0 %255 }
 0x138   : > { %v257_v10 = vmul.f32 0.03125, %v256_v9 }
 0x13a   : > { %v258_v11 = vadd.f32 1e-12, %v257_v10 }
 0x13c   : > { %402 = vrsqrt.f32 %v258_v11 }
 0x146   : > { %v403_v12 = vpop.eup %402 }
 0x147   : > { %v260_v14 = vmul.f32 %v403_v12, %v252_v6 }
 0x149   : > { %v267_v16 = vmul.f32 %v374_v13, %v260_v14 }
 0x14b   : > { %v274_v17 = vadd.f32 %v375_v15, %v267_v16 }
 0x14d   : > { %275 = vst.msk [vmem:[%s240_s5] sm:$0xff] %vm246_vm0, %v274_v17 }
 0x14e PF: > { %s14_s17 = sadd.s32 1, %s426_s17   ;;  %s503_s15 = smov %s422_s16 }
 0x14f   : > { %p11_p5 = scmp.ge.s32.totalorder %s14_s17, 4   ;;  %s504_s16 = smov %s506_s18 }
 0x151   :  { %13 = sbr.rel (!%p11_p5) target bundleno = 2 (0x2), region = 69 }

// kernel: transformer_forward.14
= control target key start
LH: loop header
LB: loop body
LE: loop exit
PB: predicated region body
PF: predicated region fallthrough
CT: control target
= control target key end

     0   :  { %s518_s21 = smov 0   ;;  %s561_s0 = inlined_call_operand.vmem [shape: bf16[16,32], index: 0, kind: input, shape index: {}]   ;;  %s562_s1 = inlined_call_operand.vmem [shape: bf16[32,32], index: 1, kind: input, shape index: {}]   ;;  %s563_s2 = inlined_call_operand.vmem [shape: f32[1,32], index: 2, kind: input, shape index: {}]   ;;  %s564_s3 = inlined_call_operand.vmem [shape: f32[16,32], index: 3, kind: input, shape index: {}]   ;;  %s565_s4 = inlined_call_operand.vmem [shape: f32[1,32], index: 4, kind: input, shape index: {}]   ;;  %s566_s5 = inlined_call_operand.vmem [shape: f32[1,32], index: 5, kind: input, shape index: {}]   ;;  %s567_s6 = inlined_call_operand.vmem [shape: f32[16,32], index: 6, kind: output, shape index: {}]  }
   0x1 LB: > { %s432_s22 = sadd.s32 4294967295, %s479_s21   ;;  %p436_p0 = scmp.ge.s32.totalorder %s479_s21, 1  ;;  %s479_s21 = sphi %s518_s21, %s16_s21  }
   0x2   : > { %p220_p1 = scmp.lt.s32.totalorder %s479_s21, 3 }
   0x4   : > { %p221_p2 = pnand %p436_p0, %p220_p1 }
   0x5   : > { %v469_v0 = vld [vmem:[%s562_s1] sm:$0xff] (!%p221_p2)   ;;  %v481_v1 = vmov (!%p221_p2), 0.0   ;;  %v470_v2 = vld [vmem:[%s562_s1 + $0x8] sm:$0xff] (!%p221_p2)   ;;  %vm482_vm0 = vmmov (!%p221_p2), 0   ;;  %p252_p3 = scmp.lt.s32.totalorder (!%p221_p2), %s432_s22, 1  ;;  %vm282_vm1 = vcmask (!%p221_p2), 261120  }
   0x6   : > { %224 = sbr.rel (%p221_p2) target bundleno = 547 (0x223), region = 44  ;;  %451 = vmatprep.subr.bf16.mxu0 (!%p221_p2), %v481_v1  ;;  %455 = vmatprep.mubr.msk.bf16.mxu0 (!%p221_p2), %vm482_vm0, %v481_v1  ;;  %v443_v6 = vld [vmem:[%s563_s2] ss:$0 sm:$0xff] (!%p221_p2) }
   0x7   : > { %452 = vmatpush3.bf16.msra.mxu0 (!%p221_p2), %v469_v0  ;;  %v444_v22 = vld [vmem:[%s565_s4] ss:$0 sm:$0xff] (!%p221_p2) }
   0x8   : > { %453 = vmatprep.subr.bf16.mxu0 (!%p221_p2), %v481_v1  ;;  %v445_v24 = vld [vmem:[%s566_s5] ss:$0 sm:$0xff] (!%p221_p2) }
   0xb   : > { %454 = vmatpush3.bf16.msra.mxu0 (!%p221_p2), %v470_v2 }
   0xd   : > { %s569_s22 = smov (!%p252_p3, %s432_s22), 1 }
   0xe   : > { %s437_s27 = sshll.u32 %s569_s22, 2  ;;  %s438_s7 = sshll.u32 %s569_s22, 3 }
   0xf   : > { %s255_s30 = scalar_lea.vmem %s561_s0, %s437_s27  ;;  %s259_s10 = scalar_lea.vmem %s564_s3, %s438_s7 }
  0x10   : > { %v265_v3 = vld [vmem:[%s255_s30] sm:$0xf]  ;;  %s263_s19 = scalar_lea.vmem %s567_s6, %s438_s7 }
  0x11   : > { %456 = vmatmul.mubr.msk.bf16.vlgmr.msra.gmra.mrb[0].mxu0 %vm282_vm1, %v265_v3  ;;  %v326_v4 = vld [vmem:[%s259_s10] sm:$0xff] }
  0xe4   : > { %v320_v5 = vpop.f32.mrb[0].mxu0 }
  0xe5   : > { %v327_v7 = vadd.f32 %v326_v4, %v320_v5  ;;  %v457_v8 = vpop.f32.mrb[1].mxu0 }
  0xe6   : > { %v323_v9 = vpop.f32.mrb[2].mxu0 }
  0xe7   : > { %v458_v10 = vpop.f32.mrb[3].mxu0  ;;  %v335_v11 = vadd.f32 %v443_v6, %v327_v7 }
  0xe9   : > { %v338_v12 = vsel %vm282_vm1, %v335_v11, 0.0 }
  0xea   : > { %339 = vadd.xlane.f32.xlu0 %v338_v12 }
 0x177   : > { %v340_v13 = vpop.xlane.xlu0 %339 }
 0x178   : > { %v342_v14 = vmul.f32 0.03125, %v340_v13 }
 0x17a   : > { %v343_v15 = vsub.f32 %v335_v11, %v342_v14 }
 0x17c   : > { %v344_v16 = vmul.f32 %v343_v15, %v343_v15 }
 0x17e   : > { %v345_v17 = vsel %vm282_vm1, %v344_v16, 0.0 }
 0x17f   : > { %346 = vadd.xlane.f32.xlu0 %v345_v17 }
 0x20c   : > { %v347_v18 = vpop.xlane.xlu0 %346 }
 0x20d   : > { %v348_v19 = vmul.f32 0.03125, %v347_v18 }
 0x20f   : > { %v349_v20 = vadd.f32 1e-12, %v348_v19 }
 0x211   : > { %471 = vrsqrt.f32 %v349_v20 }
 0x21b   : > { %v472_v21 = vpop.eup %471 }
 0x21c   : > { %v351_v23 = vmul.f32 %v472_v21, %v343_v15 }
 0x21e   : > { %v358_v25 = vmul.f32 %v444_v22, %v351_v23 }
 0x220   : > { %v365_v26 = vadd.f32 %v445_v24, %v358_v25 }
 0x222   : > { %366 = vst.msk [vmem:[%s263_s19] sm:$0xff] %vm282_vm1, %v365_v26 }
 0x223 PF: > { %s16_s21 = sadd.s32 1, %s479_s21  }
 0x224   : > { %p13_p4 = scmp.ge.s32.totalorder %s16_s21, 4  }
 0x226   :  { %15 = sbr.rel (!%p13_p4) target bundleno = 1 (0x1), region = 77 }

// kernel: transformer_forward.13
= control target key start
LH: loop header
LB: loop body
LE: loop exit
PB: predicated region body
PF: predicated region fallthrough
CT: control target
= control target key end

     0   :  { %s850_s9 = smov 0   ;;  %s949_s0 = inlined_call_operand.vmem [shape: bf16[2,8,96], index: 0, kind: input, shape index: {}]   ;;  %s950_s1 = inlined_call_operand.vmem [shape: f32[2,1,8], index: 1, kind: input, shape index: {}]   ;;  %s951_s2 = inlined_call_operand.vmem [shape: bf16[2,8,32], index: 2, kind: output, shape index: {}]  }
   0x1 LB: > { %s687_s10 = sadd.s32 4294967295, %s817_s9   ;;  %p691_p0 = scmp.ge.s32.totalorder %s817_s9, 1  ;;  %s817_s9 = sphi %s850_s9, %s12_s9  }
   0x2   : > { %p119_p1 = scmp.lt.s32.totalorder %s817_s9, 3 }
   0x4   : > { %p120_p2 = pnand %p691_p0, %p119_p1 }
   0x5   : > { %p142_p3 = scmp.lt.s32.totalorder (!%p120_p2), %s687_s10, 1  ;;  %v819_v0 = vmov (!%p120_p2), 0.0   ;;  %vm820_vm0 = vmmov (!%p120_p2), 0   ;;  %s821_s15 = smov (!%p120_p2), 96   ;;  %vm167_vm1 = vcmask (!%p120_p2), 64512   ;;  %vm231_vm2 = vcmask (!%p120_p2), 1043456  }
   0x6   : > { %123 = sbr.rel (%p120_p2) target bundleno = 1602 (0x642), region = 28  ;;  %722 = vmatprep.subr.bf16.mxu0 (!%p120_p2), %v819_v0  ;;  %724 = vmatprep.mubr.msk.bf16.mxu0 (!%p120_p2), %vm820_vm0, %v819_v0  ;;  %s822_s16 = smov (!%p120_p2), 64   ;;  %vm618_vm3 = vcmask (!%p120_p2), 130048   ;;  %vm620_vm4 = vcmask (!%p120_p2), 195584   ;;  %vm623_vm5 = vcmask (!%p120_p2), 257024  }
   0x7   : > { %728 = vmatprep.subr.bf16.mxu1 (!%p120_p2), %v819_v0  ;;  %730 = vmatprep.mubr.msk.bf16.mxu1 (!%p120_p2), %vm820_vm0, %v819_v0  ;;  %s823_s17 = smov (!%p120_p2), 88   ;;  %s824_s21 = smov (!%p120_p2), 72  }
   0x8   : > { %s825_s22 = smov (!%p120_p2), 120   ;;  %s826_s23 = smov (!%p120_p2), 80  }
   0x9   : > { %s827_s24 = smov (!%p120_p2), 112   ;;  %s828_s25 = smov (!%p120_p2), 104  }
   0xa   : > { %s829_s26 = smov (!%p120_p2), 56   ;;  %s830_s27 = smov (!%p120_p2), 48  }
   0xb   : > { %s831_s28 = smov (!%p120_p2), 40   ;;  %s832_s29 = smov (!%p120_p2), 8  }
   0xc   : > { %s833_s30 = smov (!%p120_p2), 16   ;;  %s834_s3 = smov (!%p120_p2), 24  }
   0xd   : > { %s953_s10 = smov (!%p142_p3, %s687_s10), 1 }
   0xe   : > { %s692_s11 = sshll.u32 %s953_s10, 2  ;;  %s148_s20 = scalar_lea.vmem %s950_s1, %s953_s10 }
   0xf   : > { %s145_s14 = scalar_lea.vmem %s949_s0, %s692_s11  ;;  %v886_v5 = vld [vmem:[%s148_s20] ss:$0 sm:$0xff]  ;;  %s152_s6 = scalar_lea.vmem %s951_s2, %s692_s11 }
  0x10   : > { %v155_v1 = vld [vmem:[%s145_s14] sm:$0xf] }
  0x11   : > { %v872_v2 = vcombine.low %v155_v1, %v155_v1 }
  0x13   : > { %165 = vrot.lane.b32.xlu0 %v872_v2, %s821_s15  ;;  %226 = vrot.lane.b32.xlu1 %v872_v2, %s822_s16 }
  0x17   : > { %277 = vrot.lane.b32.xlu1 %v872_v2, %s823_s17 }
  0x85   : > { %v166_v3 = vpop.permute.xlu0 %165  ;;  %v227_v12 = vpop.permute.xlu1 %226 }
  0x86   : > { %v172_v4 = vsel %vm167_vm1, %v166_v3, 0  ;;  %v233_v13 = vsel %vm231_vm2, %v227_v12, 0 }
  0x87   : > { %723 = vmatpush3.bf16.xpose.msra.mxu0 %v172_v4  ;;  %729 = vmatpush3.bf16.msra.mxu1 %v233_v13 }
  0x88   : > { %740 = vmatprep.subr.bf16.mxu0 %v819_v0  ;;  %734 = vmatprep.subr.bf16.mxu1 %v819_v0 }
  0x89   : > { %v278_v19 = vpop.permute.xlu1 %277 }
  0x8a   : > { %v283_v25 = vsel %vm167_vm1, %v278_v19, 0 }
  0x8e   : > { %725 = vmatmul.mubr.msk.bf16.vlgmr.msra.gmra.mrb[0].mxu0 %vm167_vm1, %v155_v1 }
  0x8f   : > { %742 = vmatprep.mubr.msk.bf16.mxu0 %vm820_vm0, %v819_v0 }
 0x161   : > { %v208_v6 = vpop.f32.mrb[0].mxu0 }
 0x162   : > { %v209_v7 = vadd.f32 %v886_v5, %v208_v6  ;;  %v726_v8 = vpop.f32.mrb[1].mxu0 }
 0x163   : > { %v211_v9 = vpop.f32.mrb[2].mxu0 }
 0x164   : > { %v727_v10 = vpop.f32.mrb[3].mxu0  ;;  %v214_v11 = vsel %vm167_vm1, %v209_v7, -inf }
 0x165   : > { %215 = vmax.xlane.f32.xlu0 %v214_v11 }
 0x17b   : > { %497 = vrot.lane.b32.xlu0 %v872_v2, %s824_s21 }
 0x1f2   : > { %v216_v14 = vpop.xlane.xlu0 %215 }
 0x1f3   : > { %v217_v15 = vsub.f32 %v209_v7, %v216_v14 }
 0x1f5   : > { %v218_v16 = vmul.f32 1.442695, %v217_v15 }
 0x1f6   : > { %v498_v28 = vpop.permute.xlu0 %497 }
 0x1f7   : > { %795 = vpow2.f32 %v218_v16  ;;  %v503_v30 = vsel %vm167_vm1, %v498_v28, 0 }
 0x201   : > { %v796_v17 = vpop.eup %795 }
 0x202   : > { %v220_v18 = vsel %vm167_vm1, %v796_v17, 0.0 }
 0x203   : > { %221 = vadd.xlane.f32.xlu1 %v220_v18 }
 0x214   : > { %275 = vrot.lane.b32.xlu1 %v872_v2, %s825_s22 }
 0x218   : > { %387 = vrot.lane.b32.xlu1 %v872_v2, %s826_s23 }
 0x21c   : > { %385 = vrot.lane.b32.xlu1 %v872_v2, %s827_s24 }
 0x220   : > { %495 = vrot.lane.b32.xlu1 %v872_v2, %s828_s25 }
 0x290   : > { %v222_v20 = vpop.xlane.xlu1 %221 }
 0x291   : > { %797 = vrcp.f32 %v222_v20 }
 0x294   : > { %v276_v23 = vpop.permute.xlu1 %275 }
 0x298   : > { %v388_v26 = vpop.permute.xlu1 %387 }
 0x299   : > { %v393_v27 = vsel %vm167_vm1, %v388_v26, 0 }
 0x29b   : > { %v798_v21 = vpop.eup %797 }
 0x29c   : > { %v224_v22 = vmul.f32 %v798_v21, %v796_v17  ;;  %v386_v29 = vpop.permute.xlu1 %385 }
 0x29e   : > { %v225_v24 = vpack.c.bf16 %v224_v22, %v224_v22 }
 0x2a0   : > { %731 = vmatmul.mubr.msk.bf16.vlgmr.msra.gmra.mrb[0].mxu1 %vm167_vm1, %v225_v24  ;;  %v496_v31 = vpop.permute.xlu1 %495 }
 0x2a1   : > { %735 = vmatpush3.bf16.xpose.msra.mxu1 %v283_v25  ;;  %736 = vmatprep.mubr.msk.bf16.mxu1 %vm820_vm0, %v819_v0 }
 0x2a2   : > { %746 = vmatprep.subr.bf16.mxu1 %v819_v0 }
 0x2a8   : > { %737 = vmatmul.mubr.msk.bf16.vlgmr.msra.gmra.mrb[4].mxu1 %vm167_vm1, %v276_v23 }
 0x2a9   : > { %747 = vmatpush3.bf16.xpose.msra.mxu1 %v393_v27  ;;  %748 = vmatprep.mubr.msk.bf16.mxu1 %vm820_vm0, %v819_v0 }
 0x2aa   : > { %758 = vmatprep.subr.bf16.mxu1 %v819_v0 }
 0x2b0   : > { %749 = vmatmul.mubr.msk.bf16.vlgmr.msra.gmra.mrb[8].mxu1 %vm167_vm1, %v386_v29 }
 0x2b1   : > { %759 = vmatpush3.bf16.xpose.msra.mxu1 %v503_v30  ;;  %760 = vmatprep.mubr.msk.bf16.mxu1 %vm820_vm0, %v819_v0 }
 0x2b8   : > { %761 = vmatmul.mubr.msk.bf16.vlgmr.msra.gmra.mrb[12].mxu1 %vm167_vm1, %v496_v31 }
 0x373   : > { %v913_v32 = vpop.f32.mrb[0].mxu1 }
 0x374   : > { %v732_v33 = vpop.f32.mrb[1].mxu1 }
 0x375   : > { %v272_v34 = vpop.f32.mrb[2].mxu1 }
 0x376   : > { %v733_v35 = vpop.f32.mrb[3].mxu1 }
 0x37b   : > { %v319_v36 = vpop.f32.mrb[4].mxu1 }
 0x37c   : > { %v320_v37 = vadd.f32 %v886_v5, %v319_v36  ;;  %v738_v38 = vpop.f32.mrb[5].mxu1 }
 0x37d   : > { %v322_v39 = vpop.f32.mrb[6].mxu1 }
 0x37e   : > { %v739_v40 = vpop.f32.mrb[7].mxu1  ;;  %v325_v41 = vsel %vm167_vm1, %v320_v37, -inf }
 0x37f   : > { %326 = vmax.xlane.f32.xlu1 %v325_v41 }
 0x383   : > { %v429_v42 = vpop.f32.mrb[8].mxu1 }
 0x384   : > { %v430_v43 = vadd.f32 %v886_v5, %v429_v42  ;;  %v750_v44 = vpop.f32.mrb[9].mxu1 }
 0x385   : > { %v432_v45 = vpop.f32.mrb[10].mxu1 }
 0x386   : > { %v435_v46 = vsel %vm167_vm1, %v430_v43, -inf  ;;  %v751_v47 = vpop.f32.mrb[11].mxu1 }
 0x387   : > { %436 = vmax.xlane.f32.xlu0 %v435_v46 }
 0x38b   : > { %v539_v48 = vpop.f32.mrb[12].mxu1 }
 0x38c   : > { %v540_v49 = vadd.f32 %v886_v5, %v539_v48  ;;  %v762_v50 = vpop.f32.mrb[13].mxu1 }
 0x38d   : > { %v542_v51 = vpop.f32.mrb[14].mxu1 }
 0x38e   : > { %v545_v52 = vsel %vm167_vm1, %v540_v49, -inf  ;;  %v763_v53 = vpop.f32.mrb[15].mxu1 }
 0x38f   : > { %546 = vmax.xlane.f32.xlu1 %v545_v52 }
 0x40c   : > { %v327_v54 = vpop.xlane.xlu1 %326 }
 0x40d   : > { %v328_v55 = vsub.f32 %v320_v37, %v327_v54 }
 0x40f   : > { %v329_v56 = vmul.f32 1.442695, %v328_v55 }
 0x411   : > { %799 = vpow2.f32 %v329_v56 }
 0x414   : > { %v437_v1 = vpop.xlane.xlu0 %436 }
 0x415   : > { %v438_v3 = vsub.f32 %v430_v43, %v437_v1 }
 0x417   : > { %v439_v4 = vmul.f32 1.442695, %v438_v3 }
 0x41b   : > { %v800_v57 = vpop.eup %799 }
 0x41c   : > { %v547_v58 = vpop.xlane.xlu1 %546  ;;  %v331_v59 = vsel %vm167_vm1, %v800_v57, 0.0 }
 0x41d   : > { %v548_v60 = vsub.f32 %v540_v49, %v547_v58  ;;  %332 = vadd.xlane.f32.xlu1 %v331_v59 }
 0x41f   : > { %v549_v61 = vmul.f32 1.442695, %v548_v60 }
 0x421   : > { %801 = vpow2.f32 %v549_v61 }
 0x422   : > { %803 = vpow2.f32 %v439_v4 }
 0x42b   : > { %v802_v62 = vpop.eup %801 }
 0x42c   : > { %v551_v63 = vsel %vm167_vm1, %v802_v62, 0.0  ;;  %v804_v5 = vpop.eup %803 }
 0x42d   : > { %552 = vadd.xlane.f32.xlu0 %v551_v63  ;;  %v441_v6 = vsel %vm167_vm1, %v804_v5, 0.0 }
 0x42e   : > { %337 = vrot.lane.b32.xlu1 %v872_v2, %s829_s26 }
 0x443   : > { %447 = vrot.lane.b32.xlu0 %v872_v2, %s830_s27 }
 0x452   : > { %442 = vadd.xlane.f32.xlu1 %v441_v6 }
 0x463   : > { %557 = vrot.lane.b32.xlu1 %v872_v2, %s831_s28 }
 0x4aa   : > { %v333_v7 = vpop.xlane.xlu1 %332 }
 0x4ab   : > { %805 = vrcp.f32 %v333_v7 }
 0x4ae   : > { %v338_v8 = vpop.permute.xlu1 %337 }
 0x4af   : > { %v343_v9 = vsel %vm231_vm2, %v338_v8, 0 }
 0x4b0   : > { %741 = vmatpush3.bf16.msra.mxu0 %v343_v9 }
 0x4b1   : > { %752 = vmatprep.subr.bf16.mxu0 %v819_v0 }
 0x4b5   : > { %v806_v10 = vpop.eup %805 }
 0x4b6   : > { %v335_v11 = vmul.f32 %v806_v10, %v800_v57 }
 0x4b8   : > { %v336_v12 = vpack.c.bf16 %v335_v11, %v335_v11 }
 0x4ba   : > { %743 = vmatmul.mubr.msk.bf16.vlgmr.msra.gmra.mrb[4].mxu0 %vm167_vm1, %v336_v12  ;;  %v553_v13 = vpop.xlane.xlu0 %552 }
 0x4bb   : > { %754 = vmatprep.mubr.msk.bf16.mxu0 %vm820_vm0, %v819_v0 }
 0x4be   : > { %v448_v14 = vpop.permute.xlu0 %447 }
 0x4bf   : > { %v453_v2 = vsel %vm231_vm2, %v448_v14, 0 }
 0x4c0   : > { %753 = vmatpush3.bf16.msra.mxu0 %v453_v2 }
 0x4c1   : > { %764 = vmatprep.subr.bf16.mxu0 %v819_v0 }
 0x4df   : > { %v443_v15 = vpop.xlane.xlu1 %442 }
 0x4e0   : > { %807 = vrcp.f32 %v443_v15 }
 0x4e1   : > { %809 = vrcp.f32 %v553_v13 }
 0x4e3   : > { %v558_v17 = vpop.permute.xlu1 %557 }
 0x4e4   : > { %v563_v19 = vsel %vm231_vm2, %v558_v17, 0 }
 0x4ea   : > { %v808_v16 = vpop.eup %807 }
 0x4eb   : > { %v445_v18 = vmul.f32 %v808_v16, %v804_v5  ;;  %v810_v21 = vpop.eup %809 }
 0x4ec   : > { %v555_v22 = vmul.f32 %v810_v21, %v802_v62 }
 0x4ed   : > { %v446_v20 = vpack.c.bf16 %v445_v18, %v445_v18 }
 0x4ee   : > { %v556_v23 = vpack.c.bf16 %v555_v22, %v555_v22 }
 0x4ef   : > { %755 = vmatmul.mubr.msk.bf16.vlgmr.msra.gmra.mrb[8].mxu0 %vm167_vm1, %v446_v20 }
 0x4f0   : > { %765 = vmatpush3.bf16.msra.mxu0 %v563_v19  ;;  %766 = vmatprep.mubr.msk.bf16.mxu0 %vm820_vm0, %v819_v0 }
 0x4f7   : > { %767 = vmatmul.mubr.msk.bf16.vlgmr.msra.gmra.mrb[12].mxu0 %vm167_vm1, %v556_v23 }
 0x58d   : > { %v379_v24 = vpop.f32.mrb[4].mxu0 }
 0x58e   : > { %606 = vrot.lane.b32.xlu1 %v379_v24, %s832_s29  ;;  %v744_v25 = vpop.f32.mrb[5].mxu0 }
 0x58f   : > { %v382_v26 = vpop.f32.mrb[6].mxu0 }
 0x590   : > { %v745_v27 = vpop.f32.mrb[7].mxu0 }
 0x5c2   : > { %v489_v28 = vpop.f32.mrb[8].mxu0 }
 0x5c3   : > { %610 = vrot.lane.b32.xlu0 %v489_v28, %s833_s30  ;;  %v756_v29 = vpop.f32.mrb[9].mxu0 }
 0x5c4   : > { %v492_v30 = vpop.f32.mrb[10].mxu0 }
 0x5c5   : > { %v757_v31 = vpop.f32.mrb[11].mxu0 }
 0x5ca   : > { %v599_v33 = vpop.f32.mrb[12].mxu0 }
 0x5cb   : > { %614 = vrot.lane.b32.xlu1 %v599_v33, %s834_s3  ;;  %v768_v0 = vpop.f32.mrb[13].mxu0 }
 0x5cc   : > { %v602_v34 = vpop.f32.mrb[14].mxu0 }
 0x5cd   : > { %v769_v35 = vpop.f32.mrb[15].mxu0 }
 0x600   : > { %v607_v36 = vpop.permute.xlu1 %606 }
 0x601   : > { %v617_v38 = vsel %vm167_vm1, %v913_v32, %v607_v36 }
 0x635   : > { %v611_v37 = vpop.permute.xlu0 %610 }
 0x636   : > { %v619_v39 = vsel %vm618_vm3, %v617_v38, %v611_v37 }
 0x63d   : > { %v615_v40 = vpop.permute.xlu1 %614 }
 0x63e   : > { %v621_v41 = vsel %vm620_vm4, %v619_v39, %v615_v40 }
 0x63f   : > { %v622_v42 = vpack.c.bf16 %v621_v41, %v621_v41 }
 0x641   : > { %624 = vst.msk [vmem:[%s152_s6] sm:$0xf] %vm623_vm5, %v622_v42 }
 0x642 PF: > { %s12_s9 = sadd.s32 1, %s817_s9  }
 0x643   : > { %p9_p4 = scmp.ge.s32.totalorder %s12_s9, 4  }
 0x645   :  { %11 = sbr.rel (!%p9_p4) target bundleno = 1 (0x1), region = 61 }

// kernel: transformer_forward.21
= control target key start
LH: loop header
LB: loop body
LE: loop exit
PB: predicated region body
PF: predicated region fallthrough
CT: control target
= control target key end

     0   :  { %11 = vsyncpa [#allocation3], 0  ;;  %s840_s0 = inlined_call_operand.vmem [shape: bf16[16,128], index: 0, kind: input, shape index: {}]   ;;  %s841_s1 = inlined_call_operand.vmem [shape: bf16[128,32], index: 1, kind: input, shape index: {}]   ;;  %s842_s2 = inlined_call_operand.vmem [shape: f32[1,32], index: 2, kind: input, shape index: {}]   ;;  %s843_s3 = inlined_call_operand.vmem [shape: f32[16,32], index: 3, kind: input, shape index: {}]   ;;  %s844_s4 = inlined_call_operand.vmem [shape: f32[1,32], index: 4, kind: input, shape index: {}]   ;;  %s845_s5 = inlined_call_operand.vmem [shape: f32[1,32], index: 5, kind: input, shape index: {}]   ;;  %s846_s6 = inlined_call_operand.hbm [shape: f32[16,32], index: 6, kind: output, shape index: {}]  }
   0x1   :  { %13 = vsyncpa [#allocation3 + $0x1], 0  ;;  %s701_s21 = smov 0   ;;  %s703_s22 = smov 0  }
   0x2   :  { %s705_s23 = smov 0   ;;  %s707_s24 = smov 0  }
   0x3 LB: > { %s722_s25 = sadd.s32 4294967295, %s661_s24   ;;  %s497_s26 = sadd.s32 4294967294, %s661_s24   ;;  %s661_s24 = sphi %s707_s24, %s852_s24   ;;  %s657_s23 = sphi %s705_s23, %s851_s23   ;;  %s653_s22 = sphi %s703_s22, %s850_s22   ;;  %s649_s21 = sphi %s701_s21, %s849_s21  }
   0x4   : > { %s726_s27 = sadd.s32 1, %s661_s24   ;;  %s162_s28 = sadd.s32 1, %s657_s23 }
   0x5   : > { %s159_s29 = ssub.s32 %s661_s24, %s726_s27  ;;  %p172_p0 = scmp.ne.s32.totalorder %s657_s23, %s653_s22 }
   0x6   : > { %p160_p1 = scmp.eq.s32.totalorder %s159_s29, 0  ;;  %p173_p2 = scmp.eq.s32.totalorder %s722_s25, 1 }
   0x7   : > { %p178_p3 = scmp.ne.s32.totalorder %s653_s22, %s649_s21  ;;  %p179_p4 = scmp.eq.s32.totalorder %s497_s26, 1 }
   0x8   : > { %s737_s30 = scalar_select %p160_p1, %s657_s23, %s162_s28  }
   0x9   : > { %p739_p5 = por %p173_p2, %p172_p0  ;;  %p743_p6 = por %p179_p4, %p178_p3 }
   0xa   : > { %p500_p7 = scmp.ge.s32.totalorder %s661_s24, 1  ;;  %p223_p8 = scmp.lt.s32.totalorder %s661_s24, 3 }
   0xc   : > { %p224_p9 = pnand %p500_p7, %p223_p8 }
   0xd   : > { %v589_v0 = vld [vmem:[%s841_s1] sm:$0xff] (!%p224_p9)   ;;  %v663_v1 = vmov (!%p224_p9), 0.0   ;;  %v590_v2 = vld [vmem:[%s841_s1 + $0x8] sm:$0xff] (!%p224_p9)   ;;  %vm664_vm0 = vmmov (!%p224_p9), 0   ;;  %v591_v3 = vld [vmem:[%s841_s1 + $0x10] sm:$0xff] (!%p224_p9)   ;;  %p256_p10 = scmp.lt.s32.totalorder (!%p224_p9), %s722_s25, 1 }
   0xe   : > { %227 = sbr.rel (%p224_p9) target bundleno = 589 (0x24d), region = 44  ;;  %528 = vmatprep.subr.bf16.mxu0 (!%p224_p9), %v663_v1  ;;  %544 = vmatprep.mubr.msk.bf16.mxu0 (!%p224_p9), %vm664_vm0, %v663_v1  ;;  %v592_v4 = vld [vmem:[%s841_s1 + $0x18] sm:$0xff] (!%p224_p9)   ;;  %v593_v5 = vld [vmem:[%s841_s1 + $0x20] sm:$0xff] (!%p224_p9)   ;;  %v594_v6 = vld [vmem:[%s841_s1 + $0x28] sm:$0xff] (!%p224_p9)   ;;  %vm382_vm1 = vcmask (!%p224_p9), 261120   ;;  %s516_s12 = sshll.u32 (!%p224_p9), %s722_s25, 7 }
   0xf   : > { %529 = vmatpush3.bf16.msra.mxu0 (!%p224_p9), %v589_v0  ;;  %v595_v7 = vld [vmem:[%s841_s1 + $0x30] sm:$0xff] (!%p224_p9)   ;;  %v596_v8 = vld [vmem:[%s841_s1 + $0x38] sm:$0xff] (!%p224_p9)   ;;  %v512_v12 = vld [vmem:[%s842_s2] ss:$0 sm:$0xff] (!%p224_p9)  ;;  %s797_s17 = scalar_lea.hbm (!%p224_p9), %s846_s6, %s516_s12 }
  0x10   : > { %530 = vmatprep.subr.bf16.mxu0 (!%p224_p9), %v663_v1  ;;  %v513_v28 = vld [vmem:[%s844_s4] ss:$0 sm:$0xff] (!%p224_p9) }
  0x11   : > { %v514_v30 = vld [vmem:[%s845_s5] ss:$0 sm:$0xff] (!%p224_p9) }
  0x13   : > { %531 = vmatpush3.bf16.msra.mxu0 (!%p224_p9), %v590_v2 }
  0x14   : > { %532 = vmatprep.subr.bf16.mxu0 (!%p224_p9), %v663_v1 }
  0x15   : > { %s257_s26 = scalar_select %p256_p10, %s722_s25, 1 }
  0x16   : > { %s665_s25 = smov [#allocation2]  }
  0x17   : > { %533 = vmatpush3.bf16.msra.mxu0 %v591_v3  ;;  %s502_s9 = sshll.u32 %s257_s26, 2  ;;  %s503_s15 = sshll.u32 %s257_s26, 3 }
  0x18   : > { %534 = vmatprep.subr.bf16.mxu0 %v663_v1  ;;  %s259_s14 = scalar_lea.vmem %s840_s0, %s502_s9  ;;  %s263_s18 = scalar_lea.vmem %s843_s3, %s503_s15 }
  0x19   : > { %v265_v9 = vld [vmem:[%s259_s14] sm:$0xf]  ;;  %s253_s26 = sand.u32 1, %s653_s22   ;;  %s603_s20 = sshll.u32 %s665_s25, 4  ;;  %s604_s20 = int_to_ptr.vmem [resolvable:$false] %s603_s20 }
  0x1a   : > { %v370_v10 = vld [vmem:[%s263_s18] sm:$0xff]  ;;  %s501_s28 = sshll.u32 %s253_s26, 3  ;;  %s413_s18 = scalar_lea.sflag [#allocation3], %s253_s26 }
  0x1b   : > { %535 = vmatpush3.bf16.msra.mxu0 %v592_v4  ;;  %s255_s13 = scalar_lea.vmem [#allocation2], %s501_s28  ;;  %s605_s28 = scalar_lea.vmem %s604_s20, 256 }
  0x1c   : > { %536 = vmatprep.subr.bf16.mxu0 %v663_v1  ;;  %s426_s14 = sshll.u32 %s255_s13, 4  ;;  %s799_s14 = int_to_ptr.vmem [resolvable:$true] %s426_s14 }
  0x1d   : > { %s599_s19 = scalar_lea.vmem %s799_s14, 128  ;;  %p606_p0 = scmp.lt.s32.totalorder %s799_s14, %s604_s20 }
  0x1e   : > { %p600_p11 = scmp.ne.s32.totalorder %s799_s14, %s599_s19  ;;  %p607_p1 = scmp.lt.s32.totalorder %s605_s28, %s599_s19 }
  0x1f   : > { %537 = vmatpush3.bf16.msra.mxu0 %v593_v5 }
  0x20   : > { %538 = vmatprep.subr.bf16.mxu0 %v663_v1  ;;  %p601_p12 = pnand %p600_p11, %p739_p5  ;;  %p608_p2 = por %p607_p1, %p606_p0 }
  0x22   : > { %p602_p13 = pneg %p601_p12 }
  0x23   : > { %539 = vmatpush3.bf16.msra.mxu0 %v594_v6 }
  0x24   : > { %540 = vmatprep.subr.bf16.mxu0 %v663_v1  ;;  %p609_p3 = pnand %p608_p2, %p602_p13 }
  0x27   : > { %541 = vmatpush3.bf16.msra.mxu0 %v595_v7 }
  0x28   : > { %542 = vmatprep.subr.bf16.mxu0 %v663_v1 }
  0x2b   : > { %543 = vmatpush3.bf16.msra.mxu0 %v596_v8 }
  0x2e   : > { %545 = vmatmul.mubr.bf16.vlgmr.msra.gmra.mrb[0].mxu0 %v265_v9 }
 0x101   : > { %v364_v11 = vpop.f32.mrb[0].mxu0 }
 0x102   : > { %v371_v13 = vadd.f32 %v370_v10, %v364_v11  ;;  %v546_v14 = vpop.f32.mrb[1].mxu0 }
 0x103   : > { %v367_v15 = vpop.f32.mrb[2].mxu0 }
 0x104   : > { %v547_v16 = vpop.f32.mrb[3].mxu0  ;;  %v379_v17 = vadd.f32 %v512_v12, %v371_v13 }
 0x106   : > { %v383_v18 = vsel %vm382_vm1, %v379_v17, 0.0 }
 0x107   : > { %384 = vadd.xlane.f32.xlu0 %v383_v18 }
 0x194   : > { %v385_v19 = vpop.xlane.xlu0 %384 }
 0x195   : > { %v387_v20 = vmul.f32 0.03125, %v385_v19 }
 0x197   : > { %v388_v21 = vsub.f32 %v379_v17, %v387_v20 }
 0x199   : > { %v389_v22 = vmul.f32 %v388_v21, %v388_v21 }
 0x19b   : > { %v390_v23 = vsel %vm382_vm1, %v389_v22, 0.0 }
 0x19c   : > { %391 = vadd.xlane.f32.xlu0 %v390_v23 }
 0x229   : > { %v392_v24 = vpop.xlane.xlu0 %391 }
 0x22a   : > { %v393_v25 = vmul.f32 0.03125, %v392_v24 }
 0x22c   : > { %v394_v26 = vadd.f32 1e-12, %v393_v25 }
 0x22e   : > { %597 = vrsqrt.f32 %v394_v26 }
 0x238   : > { %v598_v27 = vpop.eup %597 }
 0x239   : > { %v396_v29 = vmul.f32 %v598_v27, %v388_v21 }
 0x23b   : > { %v403_v31 = vmul.f32 %v513_v28, %v396_v29 }
 0x23d   : > { %v410_v32 = vadd.f32 %v514_v30, %v403_v31 }
 0x23f   : > { %411 = vst.msk [vmem:[%s255_s13] sm:$0xff] %vm382_vm1, %v410_v32 }
 0x240   : > { %612 = shalt.err (!%p609_p3)
}
 0x241   : > { %s613_s26 = scalar_lea.hbm %s797_s17, 128  ;;  %s617_s10 = scalar_lea.hbm %s846_s6, 256 }
 0x242   : > { %p614_p4 = scmp.ne.s32.totalorder %s797_s17, %s613_s26  ;;  %p618_p9 = scmp.lt.u32.totalorder %s797_s17, %s846_s6 }
 0x243   : > { %p619_p10 = scmp.lt.u32.totalorder %s617_s10, %s613_s26  ;;  %p621_p12 = scmp.lt.u32.totalorder %s613_s26, %s797_s17 }
 0x244   : > { %p615_p7 = pnand %p614_p4, %p739_p5 }
 0x245   : > { %p620_p11 = por %p619_p10, %p618_p9 }
 0x246   : > { %p616_p8 = pneg %p615_p7 }
 0x247   : > { %p622_p13 = por %p621_p12, %p620_p11 }
 0x249   : > { %p623_p0 = pnand %p622_p13, %p616_p8 }
 0x24b   : > { %626 = shalt.err (!%p623_p0)
}
 0x24c   : > { %548 = dma.vmem_to_hbm [thread:$0]  (%p739_p5), %s799_s14, 128, %s797_s17, %s413_s18  }
 0x24d PF: > { %p554_p1 = scmp.ge.s32.totalorder %s661_s24, 2  ;;  %s438_s13 = sand.u32 1, %s649_s21  }
 0x24e   : > { %s439_s15 = scalar_lea.sflag [#allocation3], %s438_s13 }
 0x24f   : > { %p551_p2 = pnand %p554_p1, %p743_p6 }
 0x251   : > { %644 = dma.done.wait (!%p551_p2), %s439_s15, 128  }
 0x252   : > { %646 = vsyncadd (!%p551_p2), %s439_s15, 4294967168  ;;  %p16_p3 = scmp.ge.s32.totalorder %s726_s27, 4   ;;  %s849_s21 = smov %s653_s22 }
 0x253   : > { %s850_s22 = smov %s657_s23  ;;  %s851_s23 = smov %s737_s30 }
 0x254   : > { %s852_s24 = smov %s726_s27  ;;  %18 = sbr.rel (!%p16_p3) target bundleno = 3 (0x3), region = 82 }
 0x25b   :  { %444 = vsyncpa [#allocation3], 1 }
 0x25c   :  { %446 = vsyncpa [#allocation3 + $0x1], 1 }

// kernel: transformer_forward.16
= control target key start
LH: loop header
LB: loop body
LE: loop exit
PB: predicated region body
PF: predicated region fallthrough
CT: control target
= control target key end

     0   :  { %s592_s21 = smov 0   ;;  %s652_s0 = inlined_call_operand.vmem [shape: bf16[16,128], index: 0, kind: input, shape index: {}]   ;;  %s653_s1 = inlined_call_operand.vmem [shape: bf16[128,32], index: 1, kind: input, shape index: {}]   ;;  %s654_s2 = inlined_call_operand.vmem [shape: f32[1,32], index: 2, kind: input, shape index: {}]   ;;  %s655_s3 = inlined_call_operand.vmem [shape: f32[16,32], index: 3, kind: input, shape index: {}]   ;;  %s656_s4 = inlined_call_operand.vmem [shape: f32[1,32], index: 4, kind: input, shape index: {}]   ;;  %s657_s5 = inlined_call_operand.vmem [shape: f32[1,32], index: 5, kind: input, shape index: {}]   ;;  %s658_s6 = inlined_call_operand.vmem [shape: f32[16,32], index: 6, kind: output, shape index: {}]  }
   0x1 LB: > { %s477_s22 = sadd.s32 4294967295, %s553_s21   ;;  %p481_p0 = scmp.ge.s32.totalorder %s553_s21, 1  ;;  %s553_s21 = sphi %s592_s21, %s16_s21  }
   0x2   : > { %p220_p1 = scmp.lt.s32.totalorder %s553_s21, 3 }
   0x4   : > { %p221_p2 = pnand %p481_p0, %p220_p1 }
   0x5   : > { %v537_v0 = vld [vmem:[%s653_s1] sm:$0xff] (!%p221_p2)   ;;  %v555_v1 = vmov (!%p221_p2), 0.0   ;;  %v538_v2 = vld [vmem:[%s653_s1 + $0x8] sm:$0xff] (!%p221_p2)   ;;  %vm556_vm0 = vmmov (!%p221_p2), 0   ;;  %v539_v3 = vld [vmem:[%s653_s1 + $0x10] sm:$0xff] (!%p221_p2)   ;;  %p252_p3 = scmp.lt.s32.totalorder (!%p221_p2), %s477_s22, 1 }
   0x6   : > { %224 = sbr.rel (%p221_p2) target bundleno = 568 (0x238), region = 44  ;;  %507 = vmatprep.subr.bf16.mxu0 (!%p221_p2), %v555_v1  ;;  %523 = vmatprep.mubr.msk.bf16.mxu0 (!%p221_p2), %vm556_vm0, %v555_v1  ;;  %v540_v4 = vld [vmem:[%s653_s1 + $0x18] sm:$0xff] (!%p221_p2)   ;;  %v541_v5 = vld [vmem:[%s653_s1 + $0x20] sm:$0xff] (!%p221_p2)   ;;  %v542_v6 = vld [vmem:[%s653_s1 + $0x28] sm:$0xff] (!%p221_p2)   ;;  %vm382_vm1 = vcmask (!%p221_p2), 261120  }
   0x7   : > { %508 = vmatpush3.bf16.msra.mxu0 (!%p221_p2), %v537_v0  ;;  %v543_v7 = vld [vmem:[%s653_s1 + $0x30] sm:$0xff] (!%p221_p2)   ;;  %v544_v8 = vld [vmem:[%s653_s1 + $0x38] sm:$0xff] (!%p221_p2)   ;;  %v493_v12 = vld [vmem:[%s654_s2] ss:$0 sm:$0xff] (!%p221_p2) }
   0x8   : > { %509 = vmatprep.subr.bf16.mxu0 (!%p221_p2), %v555_v1  ;;  %v494_v28 = vld [vmem:[%s656_s4] ss:$0 sm:$0xff] (!%p221_p2) }
   0x9   : > { %v495_v30 = vld [vmem:[%s657_s5] ss:$0 sm:$0xff] (!%p221_p2) }
   0xb   : > { %510 = vmatpush3.bf16.msra.mxu0 (!%p221_p2), %v538_v2 }
   0xc   : > { %511 = vmatprep.subr.bf16.mxu0 (!%p221_p2), %v555_v1 }
   0xd   : > { %s660_s22 = smov (!%p252_p3, %s477_s22), 1 }
   0xe   : > { %s482_s13 = sshll.u32 %s660_s22, 2  ;;  %s483_s19 = sshll.u32 %s660_s22, 3 }
   0xf   : > { %512 = vmatpush3.bf16.msra.mxu0 %v539_v3  ;;  %s255_s18 = scalar_lea.vmem %s652_s0, %s482_s13  ;;  %s259_s24 = scalar_lea.vmem %s655_s3, %s483_s19 }
  0x10   : > { %513 = vmatprep.subr.bf16.mxu0 %v555_v1  ;;  %v265_v9 = vld [vmem:[%s255_s18] sm:$0xf]  ;;  %s263_s8 = scalar_lea.vmem %s658_s6, %s483_s19 }
  0x11   : > { %v370_v10 = vld [vmem:[%s259_s24] sm:$0xff] }
  0x13   : > { %514 = vmatpush3.bf16.msra.mxu0 %v540_v4 }
  0x14   : > { %515 = vmatprep.subr.bf16.mxu0 %v555_v1 }
  0x17   : > { %516 = vmatpush3.bf16.msra.mxu0 %v541_v5 }
  0x18   : > { %517 = vmatprep.subr.bf16.mxu0 %v555_v1 }
  0x1b   : > { %518 = vmatpush3.bf16.msra.mxu0 %v542_v6 }
  0x1c   : > { %519 = vmatprep.subr.bf16.mxu0 %v555_v1 }
  0x1f   : > { %520 = vmatpush3.bf16.msra.mxu0 %v543_v7 }
  0x20   : > { %521 = vmatprep.subr.bf16.mxu0 %v555_v1 }
  0x23   : > { %522 = vmatpush3.bf16.msra.mxu0 %v544_v8 }
  0x26   : > { %524 = vmatmul.mubr.bf16.vlgmr.msra.gmra.mrb[0].mxu0 %v265_v9 }
  0xf9   : > { %v364_v11 = vpop.f32.mrb[0].mxu0 }
  0xfa   : > { %v371_v13 = vadd.f32 %v370_v10, %v364_v11  ;;  %v525_v14 = vpop.f32.mrb[1].mxu0 }
  0xfb   : > { %v367_v15 = vpop.f32.mrb[2].mxu0 }
  0xfc   : > { %v526_v16 = vpop.f32.mrb[3].mxu0  ;;  %v379_v17 = vadd.f32 %v493_v12, %v371_v13 }
  0xfe   : > { %v383_v18 = vsel %vm382_vm1, %v379_v17, 0.0 }
  0xff   : > { %384 = vadd.xlane.f32.xlu0 %v383_v18 }
 0x18c   : > { %v385_v19 = vpop.xlane.xlu0 %384 }
 0x18d   : > { %v387_v20 = vmul.f32 0.03125, %v385_v19 }
 0x18f   : > { %v388_v21 = vsub.f32 %v379_v17, %v387_v20 }
 0x191   : > { %v389_v22 = vmul.f32 %v388_v21, %v388_v21 }
 0x193   : > { %v390_v23 = vsel %vm382_vm1, %v389_v22, 0.0 }
 0x194   : > { %391 = vadd.xlane.f32.xlu0 %v390_v23 }
 0x221   : > { %v392_v24 = vpop.xlane.xlu0 %391 }
 0x222   : > { %v393_v25 = vmul.f32 0.03125, %v392_v24 }
 0x224   : > { %v394_v26 = vadd.f32 1e-12, %v393_v25 }
 0x226   : > { %545 = vrsqrt.f32 %v394_v26 }
 0x230   : > { %v546_v27 = vpop.eup %545 }
 0x231   : > { %v396_v29 = vmul.f32 %v546_v27, %v388_v21 }
 0x233   : > { %v403_v31 = vmul.f32 %v494_v28, %v396_v29 }
 0x235   : > { %v410_v32 = vadd.f32 %v495_v30, %v403_v31 }
 0x237   : > { %411 = vst.msk [vmem:[%s263_s8] sm:$0xff] %vm382_vm1, %v410_v32 }
 0x238 PF: > { %s16_s21 = sadd.s32 1, %s553_s21  }
 0x239   : > { %p13_p4 = scmp.ge.s32.totalorder %s16_s21, 4  }
 0x23b   :  { %15 = sbr.rel (!%p13_p4) target bundleno = 1 (0x1), region = 77 }

// kernel: transformer_forward.15
= control target key start
LH: loop header
LB: loop body
LE: loop exit
PB: predicated region body
PF: predicated region fallthrough
CT: control target
= control target key end

     0   :  { %s499_s12 = smov 0   ;;  %s501_s13 = smov 0   ;;  %s541_s0 = inlined_call_operand.vmem [shape: f32[16,32], index: 0, kind: input, shape index: {}]   ;;  %s542_s1 = inlined_call_operand.vmem [shape: bf16[32,128], index: 1, kind: input, shape index: {}]   ;;  %s543_s2 = inlined_call_operand.vmem [shape: f32[1,128], index: 2, kind: input, shape index: {}]   ;;  %s544_s3 = inlined_call_operand.vmem [shape: bf16[16,128], index: 3, kind: output, shape index: {}]  }
   0x1   :  { %s503_s14 = smov 0  }
   0x2 LB: > { %s25_s15 = sadd.s32 1, %s471_s13  ;;  %p403_p0 = scmp.ge.s32.totalorder %s475_s14, 1  ;;  %s475_s14 = sphi %s503_s14, %s13_s14   ;;  %s471_s13 = sphi %s501_s13, %s546_s13   ;;  %s467_s12 = sphi %s499_s12, %s545_s12  }
   0x3   : > { %p27_p1 = scmp.ge.s32.totalorder %s25_s15, 2  ;;  %p167_p2 = scmp.lt.s32.totalorder %s475_s14, 3 }
   0x5   : > { %s548_s15 = smov (%p27_p1, %s25_s15), 0  ;;  %p168_p3 = pnand %p403_p0, %p167_p2 }
   0x6   : > { %v449_v0 = vld [vmem:[%s542_s1] sm:$0xff] (!%p168_p3)   ;;  %v477_v1 = vmov (!%p168_p3), 0.0   ;;  %v450_v2 = vld [vmem:[%s542_s1 + $0x8] sm:$0xff] (!%p168_p3)   ;;  %vm478_vm0 = vmmov (!%p168_p3), 0   ;;  %p199_p4 = scmp.lt.s32.totalorder (!%p168_p3), %s467_s12, 1  ;;  %vm243_vm1 = vcmask (!%p168_p3), 261120  }
   0x7   : > { %171 = sbr.rel (%p168_p3) target bundleno = 262 (0x106), region = 32  ;;  %415 = vmatprep.subr.bf16.mxu0 (!%p168_p3), %v477_v1  ;;  %419 = vmatprep.mubr.msk.bf16.mxu0 (!%p168_p3), %vm478_vm0, %v477_v1  ;;  %v406_v5 = vld [vmem:[%s543_s2] ss:$0 sm:$0xff] (!%p168_p3) }
   0x8   : > { %416 = vmatpush3.bf16.msra.mxu0 (!%p168_p3), %v449_v0 }
   0x9   : > { %417 = vmatprep.subr.bf16.mxu0 (!%p168_p3), %v477_v1 }
   0xc   : > { %418 = vmatpush3.bf16.msra.mxu0 (!%p168_p3), %v450_v2 }
   0xe   : > { %s550_s12 = smov (!%p199_p4, %s467_s12), 1 }
   0xf   : > { %s404_s20 = sshll.u32 %s550_s12, 3  ;;  %s405_s26 = sshll.u32 %s550_s12, 2 }
  0x10   : > { %s202_s23 = scalar_lea.vmem %s541_s0, %s404_s20  ;;  %s216_s29 = scalar_lea.vmem %s544_s3, %s405_s26 }
  0x11   : > { %v218_v3 = vld [vmem:[%s202_s23] sm:$0xff] }
  0x12   : > { %v219_v4 = vpack.c.bf16 %v218_v3, %v218_v3 }
  0x14   : > { %420 = vmatmul.mubr.msk.bf16.vlgmr.msra.gmra.mrb[0].mxu0 %vm243_vm1, %v219_v4 }
  0xe7   : > { %v281_v6 = vpop.f32.mrb[0].mxu0 }
  0xe8   : > { %v282_v7 = vadd.f32 %v406_v5, %v281_v6  ;;  %v421_v8 = vpop.f32.mrb[1].mxu0 }
  0xe9   : > { %v284_v9 = vpop.f32.mrb[2].mxu0 }
  0xea   : > { %v288_v10 = vmul.f32 0.044715, %v282_v7  ;;  %v422_v11 = vpop.f32.mrb[3].mxu0  ;;  %v287_v17 = vmul.f32 0.5, %v282_v7 }
  0xec   : > { %v289_v12 = vmul.f32 %v288_v10, %v282_v7 }
  0xee   : > { %v290_v13 = vmul.f32 %v289_v12, %v282_v7 }
  0xf0   : > { %v291_v14 = vadd.f32 %v290_v13, %v282_v7 }
  0xf2   : > { %v292_v15 = vmul.f32 0.7978846, %v291_v14 }
  0xf4   : > { %451 = vtanh.f32 %v292_v15 }
  0xfe   : > { %v452_v16 = vpop.eup %451 }
  0xff   : > { %v294_v18 = vadd.f32 1.0, %v452_v16 }
 0x101   : > { %v295_v19 = vmul.f32 %v294_v18, %v287_v17 }
 0x103   : > { %v296_v20 = vpack.c.bf16 %v295_v19, %v295_v19 }
 0x105   : > { %297 = vst [vmem:[%s216_s29] sm:$0xf] %v296_v20 }
 0x106 PF: > { %s13_s14 = sadd.s32 1, %s475_s14   ;;  %s545_s12 = smov %s471_s13 }
 0x107   : > { %p10_p5 = scmp.ge.s32.totalorder %s13_s14, 4   ;;  %s546_s13 = smov %s548_s15 }
 0x109   :  { %12 = sbr.rel (!%p10_p5) target bundleno = 2 (0x2), region = 68 }

</bundles_post_ra>
